<compile_context>
chip_gen: v7x
topology: tpu7x:2x2x1
jax: 0.10.0
libtpu: 0.0.40
codegen_flags: <defaults>
</compile_context>

<pallas_src>
import functools

import jax
import jax.numpy as jnp
import numpy as np
from jax import lax
from jax.experimental import pallas as pl
from jax.experimental.pallas import tpu as pltpu


# ----------------------------------------------------------------------------
# Kernel 1: per-frame 512-bin color histogram (L2-normalized).
# ----------------------------------------------------------------------------
def _histogram_kernel(r_ref, g_ref, b_ref, hist_ref, rg_ref, bb_ref, *, hw_chunk):
    # r/g/b_ref: (F, HW) uint8 channel planes for F frames.
    # hist_ref : (F, 8, 64) f32 output; flat bin index = b*64 + r*8 + g.
    # rg_ref, bb_ref: (F, HW) int32 VMEM scratch (precomputed bin values).
    F, HW = rg_ref.shape
    n_chunks = HW // hw_chunk  # wrapper guarantees hw_chunk divides HW

    # Whole-block, aligned, vectorized bin extraction (one pass over all frames).
    rg_ref[...] = ((r_ref[...].astype(jnp.int32) >> 5) << 3) + \
                  (g_ref[...].astype(jnp.int32) >> 5)           # [0, 64)
    bb_ref[...] = b_ref[...].astype(jnp.int32) >> 5             # [0, 8)

    iota64 = lax.broadcasted_iota(jnp.int32, (64, hw_chunk), 0)
    iota8 = lax.broadcasted_iota(jnp.int32, (8, hw_chunk), 0)

    for f in range(F):                       # F kept small (<=8) to bound unroll
        hist = jnp.zeros((8, 64), jnp.float32)
        for c in range(n_chunks):
            lo = c * hw_chunk
            rg = rg_ref[f:f + 1, lo:lo + hw_chunk]               # (1, chunk)
            bb = bb_ref[f:f + 1, lo:lo + hw_chunk]               # (1, chunk)
            rg_oh = (iota64 == rg).astype(jnp.bfloat16)          # (64, chunk)
            b_oh = (iota8 == bb).astype(jnp.bfloat16)            # (8, chunk)
            # (8, chunk) x (64, chunk)^T -> (8, 64): only 8 LHS rows per matmul,
            # ~8x fewer MXU pushes than the (64, chunk) x (8, chunk)^T orientation.
            hist = hist + lax.dot_general(
                b_oh, rg_oh, (((1,), (1,)), ((), ())),
                preferred_element_type=jnp.float32)              # exact counts
        inv = lax.rsqrt(jnp.maximum(jnp.sum(hist * hist), 1e-24))
        hist_ref[f] = hist * inv             # torch F.normalize(p=2, dim=-1)


# ----------------------------------------------------------------------------
# Kernel 2: banded self-similarity + fc + relu (per batch element).
# ----------------------------------------------------------------------------
def _similarity_kernel(x_ref, w_ref, b_ref, out_ref, xp_ref, *,
                       lookup_window, block_t):
    # x_ref: (1, T, 512) f32 ; w_ref: (L, D) f32 ; b_ref: (1, D) f32
    # out_ref: (1, T, D) f32 ; xp_ref: (T + L - 1, 512) f32 scratch (zero-padded).
    T = x_ref.shape[1]
    C = x_ref.shape[2]
    L = lookup_window
    half = (L - 1) // 2

    # Only the pad rows need clearing; the middle T rows are fully overwritten.
    if half > 0:
        pad = jnp.zeros((half, C), jnp.float32)
        xp_ref[0:half, :] = pad
        xp_ref[half + T:, :] = pad
    xp_ref[half:half + T, :] = x_ref[0]

    w = w_ref[...]                                               # (L, D)
    bias = b_ref[...]                                            # (1, D)

    for t0 in range(0, T, block_t):
        bt = min(block_t, T - t0)
        q = x_ref[0, t0:t0 + bt, :]                              # (bt, C)
        wnd = xp_ref[t0:t0 + bt + L - 1, :]                      # (bt+L-1, C)
        # s[i, j] = x[t0+i] . xpad[t0+j]   =>   banded[t0+i, l] = s[i, i+l]
        s = lax.dot_general(q, wnd, (((1,), (1,)), ((), ())),
                            preferred_element_type=jnp.float32)  # (bt, bt+L-1)
        # Static intra-block skew, assembled once and consumed by a fused fc.
        band = jnp.concatenate([s[i:i + 1, i:i + L] for i in range(bt)],
                               axis=0)                           # (bt, L)
        y = jnp.dot(band, w, preferred_element_type=jnp.float32)  # (bt, D)
        out_ref[0, t0:t0 + bt, :] = jnp.maximum(y + bias, 0.0)


# ----------------------------------------------------------------------------
# Wrapper
# ----------------------------------------------------------------------------
def _pick_hw_chunk(hw, max_chunk=2048):
    if hw <= max_chunk:
        return hw
    for cand in range(max_chunk, 255, -1):
        if hw % cand == 0:
            return cand
    return hw  # fall back to a single chunk


def color_histograms_forward(frames, fc_weight, fc_bias, lookup_window):
    """frames: (B, T, H, W, 3) integer-valued in [0, 256); fc_weight: (D, L); fc_bias: (D,)."""
    B, T, H, W, C = frames.shape
    assert C == 3
    assert lookup_window % 2 == 1
    HW = H * W
    BT = B * T
    L = lookup_window
    D = fc_weight.shape[0]

    # TODO(synk): in production accept uint8 channel-plane frames directly from the
    # data pipeline; this cast + de-interleave is an extra XLA pass over HBM.
    f_u8 = frames.astype(jnp.uint8).reshape(BT, HW, 3)
    r_plane = f_u8[:, :, 0]
    g_plane = f_u8[:, :, 1]
    b_plane = f_u8[:, :, 2]

    # Frames per grid step: 8 (block sublane-dim must be a multiple of 8 or full).
    F = 8 if BT % 8 == 0 else BT
    hw_chunk = _pick_hw_chunk(HW)

    hist = pl.pallas_call(
        functools.partial(_histogram_kernel, hw_chunk=hw_chunk),
        out_shape=jax.ShapeDtypeStruct((BT, 8, 64), jnp.float32),
        grid=(BT // F,),
        in_specs=[
            pl.BlockSpec((F, HW), lambda i: (i, 0)),
            pl.BlockSpec((F, HW), lambda i: (i, 0)),
            pl.BlockSpec((F, HW), lambda i: (i, 0)),
        ],
        out_specs=pl.BlockSpec((F, 8, 64), lambda i: (i, 0, 0)),
        scratch_shapes=[
            pltpu.VMEM((F, HW), jnp.int32),
            pltpu.VMEM((F, HW), jnp.int32),
        ],
        compiler_params=pltpu.CompilerParams(
            dimension_semantics=("parallel",),
            vmem_limit_bytes=32 * 1024 * 1024),
    )(r_plane, g_plane, b_plane)
    # (8, 64) row-major flatten == bin index b*64 + r*8 + g (a permutation of the
    # reference ordering; the similarity / fc output is permutation-invariant).
    hist = hist.reshape(B, T, 512)

    w_t = fc_weight.T              # (L, D) kernel-friendly layout
    b2 = fc_bias.reshape(1, D)
    block_t = min(128, T)

    out = pl.pallas_call(
        functools.partial(_similarity_kernel, lookup_window=L, block_t=block_t),
        out_shape=jax.ShapeDtypeStruct((B, T, D), jnp.float32),
        grid=(B,),
        in_specs=[
            pl.BlockSpec((1, T, 512), lambda b: (b, 0, 0)),
            pl.BlockSpec((L, D), lambda b: (0, 0)),
            pl.BlockSpec((1, D), lambda b: (0, 0)),
        ],
        out_specs=pl.BlockSpec((1, T, D), lambda b: (b, 0, 0)),
        scratch_shapes=[pltpu.VMEM((T + L - 1, 512), jnp.float32)],
        compiler_params=pltpu.CompilerParams(
            dimension_semantics=("parallel",),
            vmem_limit_bytes=32 * 1024 * 1024),
    )(hist, w_t, b2)
    return out


# ----------------------------------------------------------------------------
# Plain-JAX reference mirroring the PyTorch module.
# ----------------------------------------------------------------------------
def reference_forward(frames, fc_weight, fc_bias, lookup_window):
    B, T, H, W, _ = frames.shape
    f = frames.astype(jnp.int32).reshape(B * T, H * W, 3)
    bins = (f[:, :, 0] // 32) * 64 + (f[:, :, 1] // 32) * 8 + (f[:, :, 2] // 32)
    prefix = (jnp.arange(B * T, dtype=jnp.int32) * 512)[:, None]
    flat = (bins + prefix).reshape(-1)
    hist = jnp.zeros((B * T * 512,), jnp.float32).at[flat].add(1.0)
    hist = hist.reshape(B, T, 512)
    norm = jnp.sqrt(jnp.sum(hist * hist, axis=2, keepdims=True))
    histn = hist / jnp.maximum(norm, 1e-12)
    sim = jnp.einsum("btd,bsd->bts", histn, histn)
    half = (lookup_window - 1) // 2
    simp = jnp.pad(sim, ((0, 0), (0, 0), (half, half)))
    idx = jnp.arange(T)[:, None] + jnp.arange(lookup_window)[None, :]     # (T, L)
    banded = jnp.take_along_axis(
        simp, jnp.broadcast_to(idx[None], (B, T, lookup_window)), axis=2)
    y = banded @ fc_weight.T + fc_bias
    return jnp.maximum(y, 0.0)


if __name__ == "__main__":
    B, T, H, W = 2, 8, 16, 16
    lookup_window = 11     # must be odd (module default is 101); L > T is exercised here
    output_dim = 32

    key = jax.random.PRNGKey(0)
    kf, kw, kb = jax.random.split(key, 3)
    frames = jax.random.randint(kf, (B, T, H, W, 3), 0, 256, dtype=jnp.int32)
    fc_weight = jax.random.normal(kw, (output_dim, lookup_window), jnp.float32) * 0.1
    fc_bias = jax.random.normal(kb, (output_dim,), jnp.float32) * 0.1

    out = color_histograms_forward(frames, fc_weight, fc_bias, lookup_window)
    out = jax.block_until_ready(out)

    ref = jax.block_until_ready(reference_forward(frames, fc_weight, fc_bias, lookup_window))
    np.testing.assert_allclose(np.asarray(out), np.asarray(ref), rtol=5e-4, atol=5e-4)

    print("KERNEL_OK")
</pallas_src>

<mosaic_0001>
module attributes {stable_mosaic.version = 11 : i64} {
  func.func @_histogram_kernel(%arg0: i32, %arg1: memref<8x256xi8, #tpu.memory_space<vmem>>, %arg2: memref<8x256xi8, #tpu.memory_space<vmem>>, %arg3: memref<8x256xi8, #tpu.memory_space<vmem>>, %arg4: memref<8x8x64xf32, #tpu.memory_space<vmem>>, %arg5: memref<8x256xi32, #tpu.memory_space<vmem>>, %arg6: memref<8x256xi32, #tpu.memory_space<vmem>>) attributes {dimension_semantics = [#tpu.dimension_semantics<parallel>], iteration_bounds = array<i64: 2>, scalar_prefetch = 0 : i64, scratch_operands = 2 : i64, tpu.core_type = #tpu.core_type<tc>, window_params = [{transform_indices = @transform_0, window_bounds = array<i64: 8, 256>}, {transform_indices = @transform_1, window_bounds = array<i64: 8, 256>}, {transform_indices = @transform_2, window_bounds = array<i64: 8, 256>}, {transform_indices = @transform_3, window_bounds = array<i64: 8, 8, 64>}]} {
    %c0 = arith.constant 0 : index
    %c0_0 = arith.constant 0 : index
    %0 = vector.load %arg1[%c0, %c0_0] : memref<8x256xi8, #tpu.memory_space<vmem>>, vector<8x256xi8>
    %1 = arith.extui %0 : vector<8x256xi8> to vector<8x256xi32>
    %c5_i32 = arith.constant 5 : i32
    %2 = vector.broadcast %c5_i32 : i32 to vector<8x256xi32>
    %3 = arith.shrsi %1, %2 : vector<8x256xi32>
    %c3_i32 = arith.constant 3 : i32
    %4 = vector.broadcast %c3_i32 : i32 to vector<8x256xi32>
    %5 = arith.shli %3, %4 : vector<8x256xi32>
    %c0_1 = arith.constant 0 : index
    %c0_2 = arith.constant 0 : index
    %6 = vector.load %arg2[%c0_1, %c0_2] : memref<8x256xi8, #tpu.memory_space<vmem>>, vector<8x256xi8>
    %7 = arith.extui %6 : vector<8x256xi8> to vector<8x256xi32>
    %c5_i32_3 = arith.constant 5 : i32
    %8 = vector.broadcast %c5_i32_3 : i32 to vector<8x256xi32>
    %9 = arith.shrsi %7, %8 : vector<8x256xi32>
    %10 = arith.addi %5, %9 : vector<8x256xi32>
    %c0_4 = arith.constant 0 : index
    %c0_5 = arith.constant 0 : index
    %11 = vector.load %arg5[%c0_4, %c0_5] : memref<8x256xi32, #tpu.memory_space<vmem>>, vector<8x256xi32>
    tpu.vector_store %arg5[%c0_4, %c0_5], %10 {strides = array<i32>} : memref<8x256xi32, #tpu.memory_space<vmem>>, vector<8x256xi32>,
    %c0_6 = arith.constant 0 : index
    %c0_7 = arith.constant 0 : index
    %12 = vector.load %arg3[%c0_6, %c0_7] : memref<8x256xi8, #tpu.memory_space<vmem>>, vector<8x256xi8>
    %13 = arith.extui %12 : vector<8x256xi8> to vector<8x256xi32>
    %c5_i32_8 = arith.constant 5 : i32
    %14 = vector.broadcast %c5_i32_8 : i32 to vector<8x256xi32>
    %15 = arith.shrsi %13, %14 : vector<8x256xi32>
    %c0_9 = arith.constant 0 : index
    %c0_10 = arith.constant 0 : index
    %16 = vector.load %arg6[%c0_9, %c0_10] : memref<8x256xi32, #tpu.memory_space<vmem>>, vector<8x256xi32>
    tpu.vector_store %arg6[%c0_9, %c0_10], %15 {strides = array<i32>} : memref<8x256xi32, #tpu.memory_space<vmem>>, vector<8x256xi32>,
    %17 = tpu.iota {dimensions = array<i32: 0>} : vector<64x256xi32>
    %18 = tpu.iota {dimensions = array<i32: 0>} : vector<8x256xi32>
    %cst = arith.constant 0.000000e+00 : f32
    %19 = vector.broadcast %cst : f32 to vector<8x64xf32>
    %c0_11 = arith.constant 0 : index
    %c0_12 = arith.constant 0 : index
    %20 = vector.load %arg5[%c0_11, %c0_12] : memref<8x256xi32, #tpu.memory_space<vmem>>, vector<1x256xi32>
    %c0_13 = arith.constant 0 : index
    %c0_14 = arith.constant 0 : index
    %21 = vector.load %arg6[%c0_13, %c0_14] : memref<8x256xi32, #tpu.memory_space<vmem>>, vector<1x256xi32>
    %22 = vector.broadcast %20 : vector<1x256xi32> to vector<64x256xi32>
    %23 = arith.cmpi eq, %17, %22 : vector<64x256xi32>
    %24 = arith.extui %23 : vector<64x256xi1> to vector<64x256xi32>
    %25 = arith.sitofp %24 : vector<64x256xi32> to vector<64x256xf32>
    %26 = arith.truncf %25 : vector<64x256xf32> to vector<64x256xbf16>
    %27 = vector.broadcast %21 : vector<1x256xi32> to vector<8x256xi32>
    %28 = arith.cmpi eq, %18, %27 : vector<8x256xi32>
    %29 = arith.extui %28 : vector<8x256xi1> to vector<8x256xi32>
    %30 = arith.sitofp %29 : vector<8x256xi32> to vector<8x256xf32>
    %31 = arith.truncf %30 : vector<8x256xf32> to vector<8x256xbf16>
    %cst_15 = arith.constant dense<0.000000e+00> : vector<8x64xf32>
    %32 = tpu.matmul %31, %26, %cst_15 {dimension_numbers = #tpu.dot_dimension_numbers<[1], [1], [0], [0], [0, 0, 1, 0], [], []>} : vector<8x256xbf16>, vector<64x256xbf16>, vector<8x64xf32> -> vector<8x64xf32>
    %33 = arith.addf %19, %32 : vector<8x64xf32>
    %34 = arith.mulf %33, %33 : vector<8x64xf32>
    %35 = vector.shape_cast %34 : vector<8x64xf32> to vector<1x8x64xf32>
    %cst_16 = arith.constant dense<0.000000e+00> : vector<1xf32>
    %36 = vector.multi_reduction <add>, %35, %cst_16 [1, 2] : vector<1x8x64xf32> to vector<1xf32>
    %37 = vector.shape_cast %36 : vector<1xf32> to vector<1x1x1xf32>
    %38 = vector.extract %37[0, 0, 0] : f32 from vector<1x1x1xf32>
    %cst_17 = arith.constant 1.000000e-24 : f32
    %39 = arith.maximumf %38, %cst_17 : f32
    %40 = math.rsqrt %39 : f32
    %41 = vector.broadcast %40 : f32 to vector<8x64xf32>
    %42 = arith.mulf %33, %41 : vector<8x64xf32>
    %c0_18 = arith.constant 0 : index
    %c0_19 = arith.constant 0 : index
    %c0_20 = arith.constant 0 : index
    %43 = vector.load %arg4[%c0_18, %c0_19, %c0_20] : memref<8x8x64xf32, #tpu.memory_space<vmem>>, vector<1x8x64xf32>
    %44 = vector.shape_cast %43 : vector<1x8x64xf32> to vector<8x64xf32>
    %45 = vector.shape_cast %42 : vector<8x64xf32> to vector<1x8x64xf32>
    tpu.vector_store %arg4[%c0_18, %c0_19, %c0_20], %45 {strides = array<i32>} : memref<8x8x64xf32, #tpu.memory_space<vmem>>, vector<1x8x64xf32>,
    %cst_21 = arith.constant 0.000000e+00 : f32
    %46 = vector.broadcast %cst_21 : f32 to vector<8x64xf32>
    %c1 = arith.constant 1 : index
    %c0_22 = arith.constant 0 : index
    %47 = vector.load %arg5[%c1, %c0_22] : memref<8x256xi32, #tpu.memory_space<vmem>>, vector<1x256xi32>
    %c1_23 = arith.constant 1 : index
    %c0_24 = arith.constant 0 : index
    %48 = vector.load %arg6[%c1_23, %c0_24] : memref<8x256xi32, #tpu.memory_space<vmem>>, vector<1x256xi32>
    %49 = vector.broadcast %47 : vector<1x256xi32> to vector<64x256xi32>
    %50 = arith.cmpi eq, %17, %49 : vector<64x256xi32>
    %51 = arith.extui %50 : vector<64x256xi1> to vector<64x256xi32>
    %52 = arith.sitofp %51 : vector<64x256xi32> to vector<64x256xf32>
    %53 = arith.truncf %52 : vector<64x256xf32> to vector<64x256xbf16>
    %54 = vector.broadcast %48 : vector<1x256xi32> to vector<8x256xi32>
    %55 = arith.cmpi eq, %18, %54 : vector<8x256xi32>
    %56 = arith.extui %55 : vector<8x256xi1> to vector<8x256xi32>
    %57 = arith.sitofp %56 : vector<8x256xi32> to vector<8x256xf32>
    %58 = arith.truncf %57 : vector<8x256xf32> to vector<8x256xbf16>
    %cst_25 = arith.constant dense<0.000000e+00> : vector<8x64xf32>
    %59 = tpu.matmul %58, %53, %cst_25 {dimension_numbers = #tpu.dot_dimension_numbers<[1], [1], [0], [0], [0, 0, 1, 0], [], []>} : vector<8x256xbf16>, vector<64x256xbf16>, vector<8x64xf32> -> vector<8x64xf32>
    %60 = arith.addf %46, %59 : vector<8x64xf32>
    %61 = arith.mulf %60, %60 : vector<8x64xf32>
    %62 = vector.shape_cast %61 : vector<8x64xf32> to vector<1x8x64xf32>
    %cst_26 = arith.constant dense<0.000000e+00> : vector<1xf32>
    %63 = vector.multi_reduction <add>, %62, %cst_26 [1, 2] : vector<1x8x64xf32> to vector<1xf32>
    %64 = vector.shape_cast %63 : vector<1xf32> to vector<1x1x1xf32>
    %65 = vector.extract %64[0, 0, 0] : f32 from vector<1x1x1xf32>
    %cst_27 = arith.constant 1.000000e-24 : f32
    %66 = arith.maximumf %65, %cst_27 : f32
    %67 = math.rsqrt %66 : f32
    %68 = vector.broadcast %67 : f32 to vector<8x64xf32>
    %69 = arith.mulf %60, %68 : vector<8x64xf32>
    %c1_28 = arith.constant 1 : index
    %c0_29 = arith.constant 0 : index
    %c0_30 = arith.constant 0 : index
    %70 = vector.load %arg4[%c1_28, %c0_29, %c0_30] : memref<8x8x64xf32, #tpu.memory_space<vmem>>, vector<1x8x64xf32>
    %71 = vector.shape_cast %70 : vector<1x8x64xf32> to vector<8x64xf32>
    %72 = vector.shape_cast %69 : vector<8x64xf32> to vector<1x8x64xf32>
    tpu.vector_store %arg4[%c1_28, %c0_29, %c0_30], %72 {strides = array<i32>} : memref<8x8x64xf32, #tpu.memory_space<vmem>>, vector<1x8x64xf32>,
    %cst_31 = arith.constant 0.000000e+00 : f32
    %73 = vector.broadcast %cst_31 : f32 to vector<8x64xf32>
    %c2 = arith.constant 2 : index
    %c0_32 = arith.constant 0 : index
    %74 = vector.load %arg5[%c2, %c0_32] : memref<8x256xi32, #tpu.memory_space<vmem>>, vector<1x256xi32>
    %c2_33 = arith.constant 2 : index
    %c0_34 = arith.constant 0 : index
    %75 = vector.load %arg6[%c2_33, %c0_34] : memref<8x256xi32, #tpu.memory_space<vmem>>, vector<1x256xi32>
    %76 = vector.broadcast %74 : vector<1x256xi32> to vector<64x256xi32>
    %77 = arith.cmpi eq, %17, %76 : vector<64x256xi32>
    %78 = arith.extui %77 : vector<64x256xi1> to vector<64x256xi32>
    %79 = arith.sitofp %78 : vector<64x256xi32> to vector<64x256xf32>
    %80 = arith.truncf %79 : vector<64x256xf32> to vector<64x256xbf16>
    %81 = vector.broadcast %75 : vector<1x256xi32> to vector<8x256xi32>
    %82 = arith.cmpi eq, %18, %81 : vector<8x256xi32>
    %83 = arith.extui %82 : vector<8x256xi1> to vector<8x256xi32>
    %84 = arith.sitofp %83 : vector<8x256xi32> to vector<8x256xf32>
    %85 = arith.truncf %84 : vector<8x256xf32> to vector<8x256xbf16>
    %cst_35 = arith.constant dense<0.000000e+00> : vector<8x64xf32>
    %86 = tpu.matmul %85, %80, %cst_35 {dimension_numbers = #tpu.dot_dimension_numbers<[1], [1], [0], [0], [0, 0, 1, 0], [], []>} : vector<8x256xbf16>, vector<64x256xbf16>, vector<8x64xf32> -> vector<8x64xf32>
    %87 = arith.addf %73, %86 : vector<8x64xf32>
    %88 = arith.mulf %87, %87 : vector<8x64xf32>
    %89 = vector.shape_cast %88 : vector<8x64xf32> to vector<1x8x64xf32>
    %cst_36 = arith.constant dense<0.000000e+00> : vector<1xf32>
    %90 = vector.multi_reduction <add>, %89, %cst_36 [1, 2] : vector<1x8x64xf32> to vector<1xf32>
    %91 = vector.shape_cast %90 : vector<1xf32> to vector<1x1x1xf32>
    %92 = vector.extract %91[0, 0, 0] : f32 from vector<1x1x1xf32>
    %cst_37 = arith.constant 1.000000e-24 : f32
    %93 = arith.maximumf %92, %cst_37 : f32
    %94 = math.rsqrt %93 : f32
    %95 = vector.broadcast %94 : f32 to vector<8x64xf32>
    %96 = arith.mulf %87, %95 : vector<8x64xf32>
    %c2_38 = arith.constant 2 : index
    %c0_39 = arith.constant 0 : index
    %c0_40 = arith.constant 0 : index
    %97 = vector.load %arg4[%c2_38, %c0_39, %c0_40] : memref<8x8x64xf32, #tpu.memory_space<vmem>>, vector<1x8x64xf32>
    %98 = vector.shape_cast %97 : vector<1x8x64xf32> to vector<8x64xf32>
    %99 = vector.shape_cast %96 : vector<8x64xf32> to vector<1x8x64xf32>
    tpu.vector_store %arg4[%c2_38, %c0_39, %c0_40], %99 {strides = array<i32>} : memref<8x8x64xf32, #tpu.memory_space<vmem>>, vector<1x8x64xf32>,
    %cst_41 = arith.constant 0.000000e+00 : f32
    %100 = vector.broadcast %cst_41 : f32 to vector<8x64xf32>
    %c3 = arith.constant 3 : index
    %c0_42 = arith.constant 0 : index
    %101 = vector.load %arg5[%c3, %c0_42] : memref<8x256xi32, #tpu.memory_space<vmem>>, vector<1x256xi32>
    %c3_43 = arith.constant 3 : index
    %c0_44 = arith.constant 0 : index
    %102 = vector.load %arg6[%c3_43, %c0_44] : memref<8x256xi32, #tpu.memory_space<vmem>>, vector<1x256xi32>
    %103 = vector.broadcast %101 : vector<1x256xi32> to vector<64x256xi32>
    %104 = arith.cmpi eq, %17, %103 : vector<64x256xi32>
    %105 = arith.extui %104 : vector<64x256xi1> to vector<64x256xi32>
    %106 = arith.sitofp %105 : vector<64x256xi32> to vector<64x256xf32>
    %107 = arith.truncf %106 : vector<64x256xf32> to vector<64x256xbf16>
    %108 = vector.broadcast %102 : vector<1x256xi32> to vector<8x256xi32>
    %109 = arith.cmpi eq, %18, %108 : vector<8x256xi32>
    %110 = arith.extui %109 : vector<8x256xi1> to vector<8x256xi32>
    %111 = arith.sitofp %110 : vector<8x256xi32> to vector<8x256xf32>
    %112 = arith.truncf %111 : vector<8x256xf32> to vector<8x256xbf16>
    %cst_45 = arith.constant dense<0.000000e+00> : vector<8x64xf32>
    %113 = tpu.matmul %112, %107, %cst_45 {dimension_numbers = #tpu.dot_dimension_numbers<[1], [1], [0], [0], [0, 0, 1, 0], [], []>} : vector<8x256xbf16>, vector<64x256xbf16>, vector<8x64xf32> -> vector<8x64xf32>
    %114 = arith.addf %100, %113 : vector<8x64xf32>
    %115 = arith.mulf %114, %114 : vector<8x64xf32>
    %116 = vector.shape_cast %115 : vector<8x64xf32> to vector<1x8x64xf32>
    %cst_46 = arith.constant dense<0.000000e+00> : vector<1xf32>
    %117 = vector.multi_reduction <add>, %116, %cst_46 [1, 2] : vector<1x8x64xf32> to vector<1xf32>
    %118 = vector.shape_cast %117 : vector<1xf32> to vector<1x1x1xf32>
    %119 = vector.extract %118[0, 0, 0] : f32 from vector<1x1x1xf32>
    %cst_47 = arith.constant 1.000000e-24 : f32
    %120 = arith.maximumf %119, %cst_47 : f32
    %121 = math.rsqrt %120 : f32
    %122 = vector.broadcast %121 : f32 to vector<8x64xf32>
    %123 = arith.mulf %114, %122 : vector<8x64xf32>
    %c3_48 = arith.constant 3 : index
    %c0_49 = arith.constant 0 : index
    %c0_50 = arith.constant 0 : index
    %124 = vector.load %arg4[%c3_48, %c0_49, %c0_50] : memref<8x8x64xf32, #tpu.memory_space<vmem>>, vector<1x8x64xf32>
    %125 = vector.shape_cast %124 : vector<1x8x64xf32> to vector<8x64xf32>
    %126 = vector.shape_cast %123 : vector<8x64xf32> to vector<1x8x64xf32>
    tpu.vector_store %arg4[%c3_48, %c0_49, %c0_50], %126 {strides = array<i32>} : memref<8x8x64xf32, #tpu.memory_space<vmem>>, vector<1x8x64xf32>,
    %cst_51 = arith.constant 0.000000e+00 : f32
    %127 = vector.broadcast %cst_51 : f32 to vector<8x64xf32>
    %c4 = arith.constant 4 : index
    %c0_52 = arith.constant 0 : index
    %128 = vector.load %arg5[%c4, %c0_52] : memref<8x256xi32, #tpu.memory_space<vmem>>, vector<1x256xi32>
    %c4_53 = arith.constant 4 : index
    %c0_54 = arith.constant 0 : index
    %129 = vector.load %arg6[%c4_53, %c0_54] : memref<8x256xi32, #tpu.memory_space<vmem>>, vector<1x256xi32>
    %130 = vector.broadcast %128 : vector<1x256xi32> to vector<64x256xi32>
    %131 = arith.cmpi eq, %17, %130 : vector<64x256xi32>
    %132 = arith.extui %131 : vector<64x256xi1> to vector<64x256xi32>
    %133 = arith.sitofp %132 : vector<64x256xi32> to vector<64x256xf32>
    %134 = arith.truncf %133 : vector<64x256xf32> to vector<64x256xbf16>
    %135 = vector.broadcast %129 : vector<1x256xi32> to vector<8x256xi32>
    %136 = arith.cmpi eq, %18, %135 : vector<8x256xi32>
    %137 = arith.extui %136 : vector<8x256xi1> to vector<8x256xi32>
    %138 = arith.sitofp %137 : vector<8x256xi32> to vector<8x256xf32>
    %139 = arith.truncf %138 : vector<8x256xf32> to vector<8x256xbf16>
    %cst_55 = arith.constant dense<0.000000e+00> : vector<8x64xf32>
    %140 = tpu.matmul %139, %134, %cst_55 {dimension_numbers = #tpu.dot_dimension_numbers<[1], [1], [0], [0], [0, 0, 1, 0], [], []>} : vector<8x256xbf16>, vector<64x256xbf16>, vector<8x64xf32> -> vector<8x64xf32>
    %141 = arith.addf %127, %140 : vector<8x64xf32>
    %142 = arith.mulf %141, %141 : vector<8x64xf32>
    %143 = vector.shape_cast %142 : vector<8x64xf32> to vector<1x8x64xf32>
    %cst_56 = arith.constant dense<0.000000e+00> : vector<1xf32>
    %144 = vector.multi_reduction <add>, %143, %cst_56 [1, 2] : vector<1x8x64xf32> to vector<1xf32>
    %145 = vector.shape_cast %144 : vector<1xf32> to vector<1x1x1xf32>
    %146 = vector.extract %145[0, 0, 0] : f32 from vector<1x1x1xf32>
    %cst_57 = arith.constant 1.000000e-24 : f32
    %147 = arith.maximumf %146, %cst_57 : f32
    %148 = math.rsqrt %147 : f32
    %149 = vector.broadcast %148 : f32 to vector<8x64xf32>
    %150 = arith.mulf %141, %149 : vector<8x64xf32>
    %c4_58 = arith.constant 4 : index
    %c0_59 = arith.constant 0 : index
    %c0_60 = arith.constant 0 : index
    %151 = vector.load %arg4[%c4_58, %c0_59, %c0_60] : memref<8x8x64xf32, #tpu.memory_space<vmem>>, vector<1x8x64xf32>
    %152 = vector.shape_cast %151 : vector<1x8x64xf32> to vector<8x64xf32>
    %153 = vector.shape_cast %150 : vector<8x64xf32> to vector<1x8x64xf32>
    tpu.vector_store %arg4[%c4_58, %c0_59, %c0_60], %153 {strides = array<i32>} : memref<8x8x64xf32, #tpu.memory_space<vmem>>, vector<1x8x64xf32>,
    %cst_61 = arith.constant 0.000000e+00 : f32
    %154 = vector.broadcast %cst_61 : f32 to vector<8x64xf32>
    %c5 = arith.constant 5 : index
    %c0_62 = arith.constant 0 : index
    %155 = vector.load %arg5[%c5, %c0_62] : memref<8x256xi32, #tpu.memory_space<vmem>>, vector<1x256xi32>
    %c5_63 = arith.constant 5 : index
    %c0_64 = arith.constant 0 : index
    %156 = vector.load %arg6[%c5_63, %c0_64] : memref<8x256xi32, #tpu.memory_space<vmem>>, vector<1x256xi32>
    %157 = vector.broadcast %155 : vector<1x256xi32> to vector<64x256xi32>
    %158 = arith.cmpi eq, %17, %157 : vector<64x256xi32>
    %159 = arith.extui %158 : vector<64x256xi1> to vector<64x256xi32>
    %160 = arith.sitofp %159 : vector<64x256xi32> to vector<64x256xf32>
    %161 = arith.truncf %160 : vector<64x256xf32> to vector<64x256xbf16>
    %162 = vector.broadcast %156 : vector<1x256xi32> to vector<8x256xi32>
    %163 = arith.cmpi eq, %18, %162 : vector<8x256xi32>
    %164 = arith.extui %163 : vector<8x256xi1> to vector<8x256xi32>
    %165 = arith.sitofp %164 : vector<8x256xi32> to vector<8x256xf32>
    %166 = arith.truncf %165 : vector<8x256xf32> to vector<8x256xbf16>
    %cst_65 = arith.constant dense<0.000000e+00> : vector<8x64xf32>
    %167 = tpu.matmul %166, %161, %cst_65 {dimension_numbers = #tpu.dot_dimension_numbers<[1], [1], [0], [0], [0, 0, 1, 0], [], []>} : vector<8x256xbf16>, vector<64x256xbf16>, vector<8x64xf32> -> vector<8x64xf32>
    %168 = arith.addf %154, %167 : vector<8x64xf32>
    %169 = arith.mulf %168, %168 : vector<8x64xf32>
    %170 = vector.shape_cast %169 : vector<8x64xf32> to vector<1x8x64xf32>
    %cst_66 = arith.constant dense<0.000000e+00> : vector<1xf32>
    %171 = vector.multi_reduction <add>, %170, %cst_66 [1, 2] : vector<1x8x64xf32> to vector<1xf32>
    %172 = vector.shape_cast %171 : vector<1xf32> to vector<1x1x1xf32>
    %173 = vector.extract %172[0, 0, 0] : f32 from vector<1x1x1xf32>
    %cst_67 = arith.constant 1.000000e-24 : f32
    %174 = arith.maximumf %173, %cst_67 : f32
    %175 = math.rsqrt %174 : f32
    %176 = vector.broadcast %175 : f32 to vector<8x64xf32>
    %177 = arith.mulf %168, %176 : vector<8x64xf32>
    %c5_68 = arith.constant 5 : index
    %c0_69 = arith.constant 0 : index
    %c0_70 = arith.constant 0 : index
    %178 = vector.load %arg4[%c5_68, %c0_69, %c0_70] : memref<8x8x64xf32, #tpu.memory_space<vmem>>, vector<1x8x64xf32>
    %179 = vector.shape_cast %178 : vector<1x8x64xf32> to vector<8x64xf32>
    %180 = vector.shape_cast %177 : vector<8x64xf32> to vector<1x8x64xf32>
    tpu.vector_store %arg4[%c5_68, %c0_69, %c0_70], %180 {strides = array<i32>} : memref<8x8x64xf32, #tpu.memory_space<vmem>>, vector<1x8x64xf32>,
    %cst_71 = arith.constant 0.000000e+00 : f32
    %181 = vector.broadcast %cst_71 : f32 to vector<8x64xf32>
    %c6 = arith.constant 6 : index
    %c0_72 = arith.constant 0 : index
    %182 = vector.load %arg5[%c6, %c0_72] : memref<8x256xi32, #tpu.memory_space<vmem>>, vector<1x256xi32>
    %c6_73 = arith.constant 6 : index
    %c0_74 = arith.constant 0 : index
    %183 = vector.load %arg6[%c6_73, %c0_74] : memref<8x256xi32, #tpu.memory_space<vmem>>, vector<1x256xi32>
    %184 = vector.broadcast %182 : vector<1x256xi32> to vector<64x256xi32>
    %185 = arith.cmpi eq, %17, %184 : vector<64x256xi32>
    %186 = arith.extui %185 : vector<64x256xi1> to vector<64x256xi32>
    %187 = arith.sitofp %186 : vector<64x256xi32> to vector<64x256xf32>
    %188 = arith.truncf %187 : vector<64x256xf32> to vector<64x256xbf16>
    %189 = vector.broadcast %183 : vector<1x256xi32> to vector<8x256xi32>
    %190 = arith.cmpi eq, %18, %189 : vector<8x256xi32>
    %191 = arith.extui %190 : vector<8x256xi1> to vector<8x256xi32>
    %192 = arith.sitofp %191 : vector<8x256xi32> to vector<8x256xf32>
    %193 = arith.truncf %192 : vector<8x256xf32> to vector<8x256xbf16>
    %cst_75 = arith.constant dense<0.000000e+00> : vector<8x64xf32>
    %194 = tpu.matmul %193, %188, %cst_75 {dimension_numbers = #tpu.dot_dimension_numbers<[1], [1], [0], [0], [0, 0, 1, 0], [], []>} : vector<8x256xbf16>, vector<64x256xbf16>, vector<8x64xf32> -> vector<8x64xf32>
    %195 = arith.addf %181, %194 : vector<8x64xf32>
    %196 = arith.mulf %195, %195 : vector<8x64xf32>
    %197 = vector.shape_cast %196 : vector<8x64xf32> to vector<1x8x64xf32>
    %cst_76 = arith.constant dense<0.000000e+00> : vector<1xf32>
    %198 = vector.multi_reduction <add>, %197, %cst_76 [1, 2] : vector<1x8x64xf32> to vector<1xf32>
    %199 = vector.shape_cast %198 : vector<1xf32> to vector<1x1x1xf32>
    %200 = vector.extract %199[0, 0, 0] : f32 from vector<1x1x1xf32>
    %cst_77 = arith.constant 1.000000e-24 : f32
    %201 = arith.maximumf %200, %cst_77 : f32
    %202 = math.rsqrt %201 : f32
    %203 = vector.broadcast %202 : f32 to vector<8x64xf32>
    %204 = arith.mulf %195, %203 : vector<8x64xf32>
    %c6_78 = arith.constant 6 : index
    %c0_79 = arith.constant 0 : index
    %c0_80 = arith.constant 0 : index
    %205 = vector.load %arg4[%c6_78, %c0_79, %c0_80] : memref<8x8x64xf32, #tpu.memory_space<vmem>>, vector<1x8x64xf32>
    %206 = vector.shape_cast %205 : vector<1x8x64xf32> to vector<8x64xf32>
    %207 = vector.shape_cast %204 : vector<8x64xf32> to vector<1x8x64xf32>
    tpu.vector_store %arg4[%c6_78, %c0_79, %c0_80], %207 {strides = array<i32>} : memref<8x8x64xf32, #tpu.memory_space<vmem>>, vector<1x8x64xf32>,
    %cst_81 = arith.constant 0.000000e+00 : f32
    %208 = vector.broadcast %cst_81 : f32 to vector<8x64xf32>
    %c7 = arith.constant 7 : index
    %c0_82 = arith.constant 0 : index
    %209 = vector.load %arg5[%c7, %c0_82] : memref<8x256xi32, #tpu.memory_space<vmem>>, vector<1x256xi32>
    %c7_83 = arith.constant 7 : index
    %c0_84 = arith.constant 0 : index
    %210 = vector.load %arg6[%c7_83, %c0_84] : memref<8x256xi32, #tpu.memory_space<vmem>>, vector<1x256xi32>
    %211 = vector.broadcast %209 : vector<1x256xi32> to vector<64x256xi32>
    %212 = arith.cmpi eq, %17, %211 : vector<64x256xi32>
    %213 = arith.extui %212 : vector<64x256xi1> to vector<64x256xi32>
    %214 = arith.sitofp %213 : vector<64x256xi32> to vector<64x256xf32>
    %215 = arith.truncf %214 : vector<64x256xf32> to vector<64x256xbf16>
    %216 = vector.broadcast %210 : vector<1x256xi32> to vector<8x256xi32>
    %217 = arith.cmpi eq, %18, %216 : vector<8x256xi32>
    %218 = arith.extui %217 : vector<8x256xi1> to vector<8x256xi32>
    %219 = arith.sitofp %218 : vector<8x256xi32> to vector<8x256xf32>
    %220 = arith.truncf %219 : vector<8x256xf32> to vector<8x256xbf16>
    %cst_85 = arith.constant dense<0.000000e+00> : vector<8x64xf32>
    %221 = tpu.matmul %220, %215, %cst_85 {dimension_numbers = #tpu.dot_dimension_numbers<[1], [1], [0], [0], [0, 0, 1, 0], [], []>} : vector<8x256xbf16>, vector<64x256xbf16>, vector<8x64xf32> -> vector<8x64xf32>
    %222 = arith.addf %208, %221 : vector<8x64xf32>
    %223 = arith.mulf %222, %222 : vector<8x64xf32>
    %224 = vector.shape_cast %223 : vector<8x64xf32> to vector<1x8x64xf32>
    %cst_86 = arith.constant dense<0.000000e+00> : vector<1xf32>
    %225 = vector.multi_reduction <add>, %224, %cst_86 [1, 2] : vector<1x8x64xf32> to vector<1xf32>
    %226 = vector.shape_cast %225 : vector<1xf32> to vector<1x1x1xf32>
    %227 = vector.extract %226[0, 0, 0] : f32 from vector<1x1x1xf32>
    %cst_87 = arith.constant 1.000000e-24 : f32
    %228 = arith.maximumf %227, %cst_87 : f32
    %229 = math.rsqrt %228 : f32
    %230 = vector.broadcast %229 : f32 to vector<8x64xf32>
    %231 = arith.mulf %222, %230 : vector<8x64xf32>
    %c7_88 = arith.constant 7 : index
    %c0_89 = arith.constant 0 : index
    %c0_90 = arith.constant 0 : index
    %232 = vector.load %arg4[%c7_88, %c0_89, %c0_90] : memref<8x8x64xf32, #tpu.memory_space<vmem>>, vector<1x8x64xf32>
    %233 = vector.shape_cast %232 : vector<1x8x64xf32> to vector<8x64xf32>
    %234 = vector.shape_cast %231 : vector<8x64xf32> to vector<1x8x64xf32>
    tpu.vector_store %arg4[%c7_88, %c0_89, %c0_90], %234 {strides = array<i32>} : memref<8x8x64xf32, #tpu.memory_space<vmem>>, vector<1x8x64xf32>,
    return
  }
  func.func @transform_0(%arg0: i32) -> (i32, i32) {
    %c0_i32 = arith.constant 0 : i32
    %c0_i32_0 = arith.constant 0 : i32
    return %arg0, %c0_i32 : i32, i32
  }
  func.func @transform_1(%arg0: i32) -> (i32, i32) {
    %c0_i32 = arith.constant 0 : i32
    %c0_i32_0 = arith.constant 0 : i32
    return %arg0, %c0_i32 : i32, i32
  }
  func.func @transform_2(%arg0: i32) -> (i32, i32) {
    %c0_i32 = arith.constant 0 : i32
    %c0_i32_0 = arith.constant 0 : i32
    return %arg0, %c0_i32 : i32, i32
  }
  func.func @transform_3(%arg0: i32) -> (i32, i32, i32) {
    %c0_i32 = arith.constant 0 : i32
    %c0_i32_0 = arith.constant 0 : i32
    %c0_i32_1 = arith.constant 0 : i32
    return %arg0, %c0_i32, %c0_i32_0 : i32, i32, i32
  }
}

</mosaic_0001>

<bundles_post_ra>
// kernel: tpu_custom_call.1
= control target key start
LH: loop header
LB: loop body
LE: loop exit
PB: predicated region body
PF: predicated region fallthrough
CT: control target
= control target key end

     0   :  { %s2926_s0 = inlined_call_operand.hbm [shape: u8[16,256], index: 0, kind: input, shape index: {}]   ;;  %s2927_s1 = inlined_call_operand.hbm [shape: u8[16,256], index: 1, kind: input, shape index: {}]   ;;  %s2928_s2 = inlined_call_operand.hbm [shape: u8[16,256], index: 2, kind: input, shape index: {}]   ;;  %s2929_s3 = inlined_call_operand.hbm [shape: f32[16,8,64], index: 3, kind: output, shape index: {}]  }
   0x1   :  { %2934 = sst [smem:[#allocation14_spill]] %s2927_s1 }
   0x2   :  { %8 = vsyncpa [#allocation5], 0 }
   0x3   :  { %10 = vsyncpa [#allocation5 + $0x1], 0 }
   0x4   :  { %11 = vsyncpa [#allocation8], 0 }
   0x5   :  { %13 = vsyncpa [#allocation8 + $0x1], 0 }
   0x6   :  { %14 = vsyncpa [#allocation6], 0 }
   0x7   :  { %16 = vsyncpa [#allocation6 + $0x1], 0  ;;  %s2207_s12 = smov 0   ;;  %s2209_s13 = smov 0  }
   0x8   :  { %s2211_s14 = smov 0   ;;  %s2213_s15 = smov 0  }
   0x9 LB: > { %s2228_s16 = sadd.s32 4294967295, %s2177_s15   ;;  %s1572_s17 = sadd.s32 4294967294, %s2177_s15   ;;  %s2177_s15 = sphi %s2213_s15, %s2967_s15   ;;  %s2173_s14 = sphi %s2211_s14, %s2966_s14   ;;  %s2169_s13 = sphi %s2209_s13, %s2965_s13   ;;  %s2165_s12 = sphi %s2207_s12, %s2964_s12  }
   0xa   : > { %s2232_s18 = sadd.s32 1, %s2177_s15   ;;  %s29_s19 = sadd.s32 1, %s2173_s14 }
   0xb   : > { %s26_s20 = ssub.s32 %s2177_s15, %s2232_s18  ;;  %p36_p0 = scmp.ne.s32.totalorder %s2173_s14, %s2169_s13 }
   0xc   : > { %p27_p1 = scmp.eq.s32.totalorder %s26_s20, 0  ;;  %p37_p2 = scmp.eq.s32.totalorder %s2177_s15, 0 }
   0xd   : > { %p42_p3 = scmp.ne.s32.totalorder %s2169_s13, %s2165_s12  ;;  %p43_p4 = scmp.eq.s32.totalorder %s2228_s16, 0 }
   0xe   : > { %s2244_s21 = scalar_select %p27_p1, %s2173_s14, %s29_s19  }
   0xf   : > { %p38_p5 = por %p37_p2, %p36_p0  ;;  %p2246_p6 = por %p43_p4, %p42_p3 }
  0x10   : > { %p118_p7 = scmp.eq.s32.totalorder %s2228_s16, 1  ;;  %p124_p8 = scmp.eq.s32.totalorder %s1572_s17, 1 }
  0x11   : > { %s2935_s22 = scalar_select %p2246_p6, 1, 0 }
  0x12   : > { %p1963_p10 = scmp.lt.s32.totalorder %s2177_s15, 2  ;;  %p2253_p11 = por %p118_p7, %p36_p0 }
  0x13   : > { %p2257_p12 = por %p124_p8, %p42_p3  ;;  %s144_s25 = sand.u32 1, %s2173_s14  }
  0x14   : > { %s2936_s23 = scalar_select %p2253_p11, 1, 0 }
  0x15   : > { %s2937_s24 = scalar_select %p2257_p12, 1, 0 }
  0x16   : > { %s2263_s26 = sshll.u32 %s2177_s15, 6  ;;  %s2267_s27 = sshll.u32 %s144_s25, 2 }
  0x17   : > { %p2269_p13 = pnand %p1963_p10, %p38_p5  ;;  %s163_s29 = sand.u32 1, %s2177_s15  }
  0x18   : > { %s2939_s1 = sld [smem:[#allocation14_spill]]  ;;  %s167_s6 = scalar_lea.vmem [#allocation7], %s2267_s27 }
  0x19   : > { %s2938_s28 = scalar_select %p2269_p13, 1, 0 }
  0x1a   : > { %s175_s7 = sshll.u32 %s167_s6, 4  ;;  %s2284_s8 = scalar_lea.sflag [#allocation8], %s163_s29  ;;  %s2281_s7 = int_to_ptr.vmem [resolvable:$true] %s175_s7 }
  0x1b   : > { %p2290_p2 = pneg %p2269_p13 }
  0x1e   : > { %s2278_s5 = scalar_lea.hbm %s2939_s1, %s2263_s26  ;;  %s2022_s19 = scalar_lea.hbm %s2939_s1, 128 }
  0x1f   : > { %s2017_s9 = scalar_lea.hbm %s2278_s5, 64  ;;  %p2023_p5 = scmp.lt.u32.totalorder %s2278_s5, %s2939_s1 }
  0x20   : > { %p2018_p1 = scmp.ne.s32.totalorder %s2278_s5, %s2017_s9  ;;  %p2024_p7 = scmp.lt.u32.totalorder %s2022_s19, %s2017_s9 }
  0x21   : > { %p2026_p10 = scmp.lt.u32.totalorder %s2017_s9, %s2278_s5 }
  0x22   : > { %p2020_p3 = pnand %p2290_p2, %p2018_p1  ;;  %p2025_p8 = por %p2024_p7, %p2023_p5 }
  0x24   : > { %p2021_p4 = pneg %p2020_p3  ;;  %p2027_p9 = por %p2026_p10, %p2025_p8 }
  0x26   : > { %p2028_p0 = pnand %p2027_p9, %p2021_p4 }
  0x28   : > { %2031 = shalt.err (!%p2028_p0)
}
  0x29   : > { %s2032_s29 = scalar_lea.vmem %s2281_s7, 64  ;;  %s2179_s4 = smov [#allocation7]  }
  0x2a   : > { %p2033_p1 = scmp.ne.s32.totalorder %s2281_s7, %s2032_s29  ;;  %s2037_s6 = sshll.u32 %s2179_s4, 4  ;;  %s2038_s6 = int_to_ptr.vmem [resolvable:$false] %s2037_s6 }
  0x2b   : > { %s2039_s11 = scalar_lea.vmem %s2038_s6, 128  ;;  %p2040_p11 = scmp.lt.s32.totalorder %s2281_s7, %s2038_s6 }
  0x2c   : > { %p2035_p3 = pnand %p2033_p1, %p2290_p2  ;;  %p2041_p6 = scmp.lt.s32.totalorder %s2039_s11, %s2032_s29 }
  0x2e   : > { %p2036_p12 = pneg %p2035_p3  ;;  %p2042_p5 = por %p2041_p6, %p2040_p11 }
  0x30   : > { %p2043_p7 = pnand %p2042_p5, %p2036_p12 }
  0x32   : > { %2046 = shalt.err (!%p2043_p7)
}
  0x33   : > { %1955 = dma.hbm_to_vmem [thread:$0]  (!%p2269_p13), %s2278_s5, 64, %s2281_s7, %s2284_s8  }
  0x34   : > { %p199_p9 = scmp.lt.s32.totalorder %s2177_s15, 3  ;;  %s2319_s19 = scalar_lea.hbm %s2926_s0, %s2263_s26 }
  0x35   : > { %p2941_p6 = scmp.ge.s32.totalorder %s2177_s15, 1  ;;  %s148_s30 = scalar_lea.vmem [#allocation4], %s2267_s27 }
  0x36   : > { %s156_s29 = sshll.u32 %s148_s30, 4  ;;  %s145_s5 = scalar_lea.sflag [#allocation5], %s144_s25  ;;  %s157_s29 = int_to_ptr.vmem [resolvable:$true] %s156_s29 }
  0x37   : > { %p2323_p11 = pnand %p2941_p6, %p199_p9  ;;  %s2047_s7 = scalar_lea.hbm %s2319_s19, 64 }
  0x38   : > { %p2048_p12 = scmp.ne.s32.totalorder %s2319_s19, %s2047_s7  ;;  %s2052_s11 = scalar_lea.hbm %s2926_s0, 128 }
  0x39   : > { %s2942_s20 = scalar_select %p2323_p11, 1, 0 }
  0x3a   : > { %p2050_p0 = pnand %p2048_p12, %p2290_p2  ;;  %p2053_p8 = scmp.lt.u32.totalorder %s2319_s19, %s2926_s0 }
  0x3b   : > { %p2054_p10 = scmp.lt.u32.totalorder %s2052_s11, %s2047_s7  ;;  %p2056_p3 = scmp.lt.u32.totalorder %s2047_s7, %s2319_s19 }
  0x3c   : > { %p2051_p4 = pneg %p2050_p0 }
  0x3d   : > { %p2055_p1 = por %p2054_p10, %p2053_p8 }
  0x3f   : > { %p2057_p5 = por %p2056_p3, %p2055_p1 }
  0x41   : > { %p2058_p7 = pnand %p2057_p5, %p2051_p4 }
  0x43   : > { %2061 = shalt.err (!%p2058_p7)
}
  0x44   : > { %s2062_s25 = scalar_lea.vmem %s157_s29, 64  ;;  %s2180_s30 = smov [#allocation4]  }
  0x45   : > { %p2063_p9 = scmp.ne.s32.totalorder %s157_s29, %s2062_s25  ;;  %s2067_s1 = sshll.u32 %s2180_s30, 4  ;;  %s2068_s1 = int_to_ptr.vmem [resolvable:$false] %s2067_s1 }
  0x46   : > { %s2069_s4 = scalar_lea.vmem %s2068_s1, 128  ;;  %p2070_p0 = scmp.lt.s32.totalorder %s157_s29, %s2068_s1 }
  0x47   : > { %p2065_p6 = pnand %p2063_p9, %p2290_p2  ;;  %p2071_p11 = scmp.lt.s32.totalorder %s2069_s4, %s2062_s25 }
  0x49   : > { %p2066_p12 = pneg %p2065_p6  ;;  %p2072_p13 = por %p2071_p11, %p2070_p0 }
  0x4b   : > { %p2073_p8 = pnand %p2072_p13, %p2066_p12 }
  0x4d   : > { %2076 = shalt.err (!%p2073_p8)
}
  0x4e   : > { %p2943_p10 = scmp.ne.s32.totalorder %s2938_s28, 0  ;;  %s2351_s11 = scalar_lea.hbm %s2928_s2, %s2263_s26 }
  0x4f   : > { %s186_s1 = scalar_lea.vmem [#allocation9], %s2267_s27  ;;  %s2077_s17 = scalar_lea.hbm %s2351_s11, 64 }
  0x50   : > { %1952 = dma.hbm_to_vmem [thread:$0]  (!%p2943_p10), %s2319_s19, 64, %s157_s29, %s145_s5  }
  0x51   : > { %s194_s9 = sshll.u32 %s186_s1, 4  ;;  %p2078_p13 = scmp.ne.s32.totalorder %s2351_s11, %s2077_s17  ;;  %s195_s9 = int_to_ptr.vmem [resolvable:$true] %s194_s9 }
  0x52   : > { %s2082_s19 = scalar_lea.hbm %s2928_s2, 128  ;;  %p2083_p1 = scmp.lt.u32.totalorder %s2351_s11, %s2928_s2 }
  0x53   : > { %p2080_p11 = pnand %p2078_p13, %p2290_p2  ;;  %p2084_p3 = scmp.lt.u32.totalorder %s2082_s19, %s2077_s17 }
  0x54   : > { %p2086_p7 = scmp.lt.u32.totalorder %s2077_s17, %s2351_s11 }
  0x55   : > { %p2081_p4 = pneg %p2080_p11  ;;  %p2085_p5 = por %p2084_p3, %p2083_p1 }
  0x57   : > { %p2087_p9 = por %p2086_p7, %p2085_p5 }
  0x59   : > { %p2088_p6 = pnand %p2087_p9, %p2081_p4 }
  0x5b   : > { %2091 = shalt.err (!%p2088_p6)
}
  0x5c   : > { %s2092_s26 = scalar_lea.vmem %s195_s9, 64  ;;  %s2181_s27 = smov [#allocation9]  }
  0x5d   : > { %p2093_p12 = scmp.ne.s32.totalorder %s195_s9, %s2092_s26  ;;  %s2097_s4 = sshll.u32 %s2181_s27, 4  ;;  %s2098_s4 = int_to_ptr.vmem [resolvable:$false] %s2097_s4 }
  0x5e   : > { %s2099_s7 = scalar_lea.vmem %s2098_s4, 128  ;;  %p2100_p13 = scmp.lt.s32.totalorder %s195_s9, %s2098_s4 }
  0x5f   : > { %p2095_p0 = pnand %p2093_p12, %p2290_p2  ;;  %p2101_p11 = scmp.lt.s32.totalorder %s2099_s7, %s2092_s26 }
  0x61   : > { %p2096_p8 = pneg %p2095_p0  ;;  %p2102_p10 = por %p2101_p11, %p2100_p13 }
  0x63   : > { %p2103_p1 = pnand %p2102_p10, %p2096_p8 }
  0x65   : > { %2106 = shalt.err (!%p2103_p1)
}
  0x66   : > { %p2944_p3 = scmp.ne.s32.totalorder %s2938_s28, 0  ;;  %p2945_p4 = scmp.ne.s32.totalorder %s2942_s20, 0 }
  0x67   : > { %s2375_s10 = sand.u32 (!%p2945_p4), 1, %s2169_s13   ;;  %p2946_p2 = scmp.ne.s32.totalorder (!%p2945_p4), %s2935_s22, 0 }
  0x68   : > { %1958 = dma.hbm_to_vmem [thread:$0]  (!%p2944_p3), %s2351_s11, 64, %s195_s9, %s2284_s8  }
  0x69   : > { %203 = sbr.rel (%p2945_p4) target bundleno = 1119 (0x45f), region = 32  ;;  %s1585_s6 = sshll.u32 (!%p2945_p4), %s2375_s10, 2 }
  0x6a   : > { %s206_s1 = scalar_lea.sflag (!%p2945_p4), [#allocation5], %s2375_s10  ;;  %s209_s17 = scalar_lea.vmem (!%p2945_p4), [#allocation4], %s1585_s6 }
  0x70   : > { %2152 = dma.done.wait (%p2946_p2), %s206_s1, 64  }
  0x71   : > { %2154 = vsyncadd (%p2946_p2), %s206_s1, 4294967232  ;;  %s214_s28 = sand.u32 1, %s2228_s16   ;;  %s218_s20 = scalar_lea.vmem [#allocation7], %s1585_s6 }
  0x72   : > { %s215_s8 = scalar_lea.sflag [#allocation8], %s214_s28 }
  0x73   : > { %2156 = dma.done.wait (%p2946_p2), %s215_s8, 128  }
  0x74   : > { %2158 = vsyncadd (%p2946_p2), %s215_s8, 4294967168  ;;  %v262_v0 = vld [vmem:[%s209_s17] sm:$0xf]  ;;  %v271_v1 = vld [vmem:[%s218_s20] sm:$0xf]  ;;  %s227_s11 = scalar_lea.vmem [#allocation9], %s1585_s6  ;;  %v291_v19 = vlaneseq }
  0x75   : > { %v282_v2 = vld [vmem:[%s227_s11] sm:$0xf]  ;;  %v263_v3 = vunpack.c.0.s8 %v262_v0  ;;  %v264_v4 = vunpack.c.1.s8 %v262_v0  ;;  %v272_v5 = vunpack.c.0.s8 %v271_v1  ;;  %v273_v6 = vunpack.c.1.s8 %v271_v1  ;;  %s2183_s9 = smov 1e-24   ;;  %s1588_s30 = sshll.u32 %s2375_s10, 6 }
  0x76   : > { %v283_v7 = vunpack.c.0.s8 %v282_v2  ;;  %v284_v8 = vunpack.c.1.s8 %v282_v2  ;;  %v2388_v26 = vshrl.u32 %v291_v19, 7  ;;  %v2182_v40 = vmov 1.0|1.0   ;;  %s2839_s26 = scalar_lea.vmem [#allocation10], %s1588_s30  ;;  %p2961_p5 = scmp.ne.s32.totalorder %s2936_s23, 0 }
  0x77   : > { %v265_v9 = vand.u32 255, %v263_v3  ;;  %v266_v10 = vand.u32 255, %v264_v4  ;;  %v274_v11 = vand.u32 255, %v272_v5  ;;  %v275_v12 = vand.u32 255, %v273_v6 }
  0x78   : > { %v285_v13 = vand.u32 255, %v283_v7  ;;  %v286_v14 = vand.u32 255, %v284_v8  ;;  %v2391_v27 = vsub.s32 1, %v2388_v26  ;;  %v2394_v28 = vsub.s32 0, %v2388_v26 }
  0x79   : > { %v267_v15 = vshra.s32 %v265_v9, 5  ;;  %v268_v16 = vshra.s32 %v266_v10, 5  ;;  %v276_v17 = vshra.s32 %v274_v11, 5  ;;  %v277_v18 = vshra.s32 %v275_v12, 5 }
  0x7a   : > { %v287_v20 = vshra.s32 %v285_v13, 5  ;;  %v288_v21 = vshra.s32 %v286_v14, 5  ;;  %v2405_v33 = vadd.s32 8, %v2388_v26  ;;  %v2408_v35 = vadd.s32 16, %v2388_v26 }
  0x7b   : > { %v269_v22 = vshll.u32 %v267_v15, 3  ;;  %v270_v23 = vshll.u32 %v268_v16, 3  ;;  %v2411_v36 = vadd.s32 24, %v2388_v26  ;;  %v2436_v42 = vadd.s32 32, %v2388_v26 }
  0x7c   : > { %289 = vst [vmem:[#allocation3] sm:$0xff] %v287_v20  ;;  %290 = vst [vmem:[#allocation3 + $0x8] sm:$0xff] %v288_v21  ;;  %v2439_v43 = vadd.s32 40, %v2388_v26  ;;  %v2462_v46 = vadd.s32 48, %v2388_v26  ;;  %v2465_v47 = vadd.s32 56, %v2388_v26 }
  0x7d   : > { %v278_v24 = vadd.s32 %v276_v17, %v269_v22  ;;  %v279_v25 = vadd.s32 %v277_v18, %v270_v23 }
  0x7f   : > { %280 = vst [vmem:[#allocation2] sm:$0xff] %v278_v24  ;;  %281 = vst [vmem:[#allocation2 + $0x8] sm:$0xff] %v279_v25 }
  0x83   : > { %v2396_v29 = vld [vmem:[#allocation3] ss:$8 sm:$0x3]  ;;  %v2398_v30 = vld [vmem:[#allocation3 + $0x1] ss:$8 sm:$0x3] }
  0x84   : > { %v373_v31 = vrot.slane %v2396_v29, %v2391_v27  ;;  %v516_v32 = vrot.slane %v2398_v30, %v2391_v27  ;;  %v369_v50 = vrot.slane %v2396_v29, %v2394_v28  ;;  %v2509_v51 = vld [vmem:[#allocation3 + $0x2] ss:$8 sm:$0x3]  ;;  %v512_v57 = vrot.slane %v2398_v30, %v2394_v28  ;;  %v2554_v59 = vld [vmem:[#allocation3 + $0x3] ss:$8 sm:$0x3] }
  0x85   : > { %v659_v55 = vrot.slane %v2509_v51, %v2391_v27  ;;  %v802_v62 = vrot.slane %v2554_v59, %v2391_v27  ;;  %v655_v0 = vrot.slane %v2509_v51, %v2394_v28  ;;  %v798_v1 = vrot.slane %v2554_v59, %v2394_v28  ;;  %v873_v5 = vld [vmem:[#allocation3 + $0x4] ss:$8 sm:$0x3]  ;;  %v2686_v11 = vld [vmem:[#allocation3 + $0x5] ss:$8 sm:$0x3] }
  0x86   : > { %v300_v34 = vld [vmem:[#allocation2] ss:$8 sm:$0x3]  ;;  %vm375_vm0 = vcmp.eq.s32.totalorder %v2388_v26, %v373_v31  ;;  %vm2415_vm1 = vcmp.eq.s32.totalorder %v2388_v26, %v516_v32  ;;  %v442_v41 = vld [vmem:[#allocation2 + $0x1] ss:$8 sm:$0x3]  ;;  %v945_v6 = vrot.slane %v873_v5, %v2391_v27  ;;  %v1088_v13 = vrot.slane %v2686_v11, %v2391_v27 }
  0x87   : > { %v309_v38 = vrot.slane %v300_v34, %v2391_v27  ;;  %v2421_v39 = vrot.slane %v300_v34, %v2394_v28  ;;  %vm1623_vm2 = vmpackc.low %vm375_vm0, %vm375_vm0  ;;  %v452_v44 = vrot.slane %v442_v41, %v2391_v27  ;;  %v2446_v45 = vrot.slane %v442_v41, %v2394_v28  ;;  %v585_v48 = vld [vmem:[#allocation2 + $0x2] ss:$8 sm:$0x3]  ;;  %v728_v53 = vld [vmem:[#allocation2 + $0x3] ss:$8 sm:$0x3] }
  0x88   : > { %1624 = vmatprep.mubr.msk.bf16.mxu0 %vm1623_vm2, %v2182_v40  ;;  %vm1661_vm7 = vmpackc.low %vm2415_vm1, %vm2415_vm1  ;;  %v2487_v49 = vrot.slane %v585_v48, %v2391_v27  ;;  %v2512_v52 = vrot.slane %v585_v48, %v2394_v28  ;;  %v2528_v56 = vrot.slane %v728_v53, %v2391_v27  ;;  %v2560_v60 = vrot.slane %v728_v53, %v2394_v28  ;;  %v871_v2 = vld [vmem:[#allocation2 + $0x4] ss:$8 sm:$0x3]  ;;  %v1014_v7 = vld [vmem:[#allocation2 + $0x5] ss:$8 sm:$0x3] }
  0x89   : > { %vm311_vm3 = vcmp.eq.s32.totalorder %v2388_v26, %v309_v38  ;;  %vm313_vm4 = vcmp.eq.s32.totalorder %v2405_v33, %v309_v38  ;;  %vm310_vm5 = vcmp.eq.s32.totalorder %v2388_v26, %v2421_v39  ;;  %vm312_vm6 = vcmp.eq.s32.totalorder %v2405_v33, %v2421_v39  ;;  %1662 = vmatprep.mubr.msk.bf16.mxu1 %vm1661_vm7, %v2182_v40  ;;  %v1157_v15 = vld [vmem:[#allocation2 + $0x6] ss:$8 sm:$0x3]  ;;  %v1159_v37 = vld [vmem:[#allocation3 + $0x6] ss:$8 sm:$0x3] }
  0x8a   : > { %vm1607_vm8 = vmpackc.low %vm313_vm4, %vm311_vm3  ;;  %vm315_vm9 = vcmp.eq.s32.totalorder %v2408_v35, %v309_v38  ;;  %vm317_vm10 = vcmp.eq.s32.totalorder %v2411_v36, %v309_v38  ;;  %vm314_vm13 = vcmp.eq.s32.totalorder %v2408_v35, %v2421_v39  ;;  %vm316_vm14 = vcmp.eq.s32.totalorder %v2411_v36, %v2421_v39  ;;  %v1300_v41 = vld [vmem:[#allocation2 + $0x7] ss:$8 sm:$0x3] }
  0x8b   : > { %1608 = vmatprep.subr.msk.bf16.mxu0 %vm1607_vm8, %v2182_v40  ;;  %vm1609_vm11 = vmpackc.low %vm312_vm6, %vm310_vm5  ;;  %vm319_vm15 = vcmp.eq.s32.totalorder %v2436_v42, %v309_v38  ;;  %vm321_vm0 = vcmp.eq.s32.totalorder %v2439_v43, %v309_v38  ;;  %vm454_vm1 = vcmp.eq.s32.totalorder %v2388_v26, %v452_v44  ;;  %vm456_vm2 = vcmp.eq.s32.totalorder %v2405_v33, %v452_v44 }
  0x8c   : > { %1610 = vmatpush1.bf16.xpose.msk.msra.mxu0 %vm1609_vm11, %v2182_v40  ;;  %vm1611_vm12 = vmpackc.low %vm317_vm10, %vm315_vm9  ;;  %vm453_vm4 = vcmp.eq.s32.totalorder %v2388_v26, %v2446_v45  ;;  %vm455_vm5 = vcmp.eq.s32.totalorder %v2405_v33, %v2446_v45  ;;  %vm458_vm7 = vcmp.eq.s32.totalorder %v2408_v35, %v452_v44  ;;  %vm460_vm8 = vcmp.eq.s32.totalorder %v2411_v36, %v452_v44 }
  0x8d   : > { %1612 = vmatprep.subr.msk.bf16.mxu0 %vm1611_vm12, %v2182_v40  ;;  %vm1613_vm3 = vmpackc.low %vm316_vm14, %vm314_vm13  ;;  %vm318_vm11 = vcmp.eq.s32.totalorder %v2436_v42, %v2421_v39  ;;  %vm320_vm12 = vcmp.eq.s32.totalorder %v2439_v43, %v2421_v39  ;;  %vm323_vm14 = vcmp.eq.s32.totalorder %v2462_v46, %v309_v38  ;;  %v881_v3 = vrot.slane %v871_v2, %v2391_v27 }
  0x8e   : > { %vm1615_vm6 = vmpackc.low %vm321_vm0, %vm319_vm15  ;;  %vm325_vm15 = vcmp.eq.s32.totalorder %v2465_v47, %v309_v38  ;;  %vm457_vm0 = vcmp.eq.s32.totalorder %v2408_v35, %v2446_v45  ;;  %v877_v4 = vrot.slane %v871_v2, %v2394_v28  ;;  %v1020_v8 = vrot.slane %v1014_v7, %v2394_v28 }
  0x8f   : > { %vm1645_vm9 = vmpackc.low %vm456_vm2, %vm454_vm1  ;;  %vm459_vm1 = vcmp.eq.s32.totalorder %v2411_v36, %v2446_v45  ;;  %v1024_v9 = vrot.slane %v1014_v7, %v2391_v27  ;;  %v941_v14 = vrot.slane %v873_v5, %v2394_v28  ;;  %v1163_v16 = vrot.slane %v1157_v15, %v2394_v28 }
  0x90   : > { %1646 = vmatprep.subr.msk.bf16.mxu1 %vm1645_vm9, %v2182_v40  ;;  %vm1647_vm10 = vmpackc.low %vm455_vm5, %vm453_vm4  ;;  %vm464_vm4 = vcmp.eq.s32.totalorder %v2439_v43, %v452_v44  ;;  %vm324_vm9 = vcmp.eq.s32.totalorder %v2465_v47, %v2421_v39  ;;  %v1167_v17 = vrot.slane %v1157_v15, %v2391_v27  ;;  %v1084_v18 = vrot.slane %v2686_v11, %v2394_v28 }
  0x91   : > { %1648 = vmatpush1.bf16.xpose.msk.msra.mxu1 %vm1647_vm10, %v2182_v40  ;;  %vm1649_vm13 = vmpackc.low %vm460_vm8, %vm458_vm7  ;;  %vm322_vm8 = vcmp.eq.s32.totalorder %v2462_v46, %v2421_v39  ;;  %vm461_vm10 = vcmp.eq.s32.totalorder %v2436_v42, %v2446_v45  ;;  %v1231_v38 = vrot.slane %v1159_v37, %v2391_v27  ;;  %v1227_v39 = vrot.slane %v1159_v37, %v2394_v28 }
  0x92   : > { %1650 = vmatprep.subr.msk.bf16.mxu1 %vm1649_vm13, %v2182_v40  ;;  %vm1617_vm2 = vmpackc.low %vm320_vm12, %vm318_vm11  ;;  %vm463_vm11 = vcmp.eq.s32.totalorder %v2439_v43, %v2446_v45  ;;  %vm466_vm12 = vcmp.eq.s32.totalorder %v2462_v46, %v452_v44  ;;  %vm468_vm13 = vcmp.eq.s32.totalorder %v2465_v47, %v452_v44 }
  0x93   : > { %vm1619_vm5 = vmpackc.low %vm325_vm15, %vm323_vm14  ;;  %vm597_vm15 = vcmp.eq.s32.totalorder %v2388_v26, %v2487_v49 }
  0x94   : > { %1614 = vmatpush1.bf16.xpose.msk.msra.mxu0 %vm1613_vm3, %v2182_v40  ;;  %vm462_vm3 = vcmp.eq.s32.totalorder %v2436_v42, %v452_v44  ;;  %vm1621_vm14 = vmpackc.low %vm324_vm9, %vm322_vm8  ;;  %vm598_vm8 = vcmp.eq.s32.totalorder %v2405_v33, %v2512_v52  ;;  %v1306_v44 = vrot.slane %v1300_v41, %v2394_v28 }
  0x95   : > { %1616 = vmatprep.subr.msk.bf16.mxu0 %vm1615_vm6, %v2182_v40  ;;  %vm1651_vm6 = vmpackc.low %vm459_vm1, %vm457_vm0  ;;  %vm599_vm0 = vcmp.eq.s32.totalorder %v2405_v33, %v2487_v49 }
  0x96   : > { %vm1653_vm7 = vmpackc.low %vm464_vm4, %vm462_vm3  ;;  %vm2515_vm4 = vcmp.eq.s32.totalorder %v2388_v26, %v369_v50 }
  0x97   : > { %vm1655_vm1 = vmpackc.low %vm463_vm11, %vm461_vm10  ;;  %vm601_vm10 = vcmp.eq.s32.totalorder %v2408_v35, %v2487_v49  ;;  %vm603_vm11 = vcmp.eq.s32.totalorder %v2411_v36, %v2487_v49 }
  0x98   : > { %vm1684_vm3 = vmpackc.low %vm599_vm0, %vm597_vm15  ;;  %vm740_vm15 = vcmp.eq.s32.totalorder %v2388_v26, %v2528_v56  ;;  %vm742_vm0 = vcmp.eq.s32.totalorder %v2405_v33, %v2528_v56 }
  0x99   : > { %1652 = vmatpush1.bf16.xpose.msk.msra.mxu1 %vm1651_vm6, %v2182_v40  ;;  %vm467_vm6 = vcmp.eq.s32.totalorder %v2465_v47, %v2446_v45  ;;  %vm1625_vm9 = vmpackc.low %vm2515_vm4, %vm2515_vm4 }
  0x9a   : > { %1654 = vmatprep.subr.msk.bf16.mxu1 %vm1653_vm7, %v2182_v40  ;;  %vm596_vm7 = vcmp.eq.s32.totalorder %v2388_v26, %v2512_v52  ;;  %vm1723_vm4 = vmpackc.low %vm742_vm0, %vm740_vm15  ;;  %vm2595_vm0 = vcmp.eq.s32.totalorder %v2388_v26, %v802_v62 }
  0x9c   : > { %1618 = vmatpush1.bf16.xpose.msk.msra.mxu0 %vm1617_vm2, %v2182_v40  ;;  %vm1657_vm2 = vmpackc.low %vm468_vm13, %vm466_vm12  ;;  %vm2546_vm13 = vcmp.eq.s32.totalorder %v2388_v26, %v659_v55 }
  0x9d   : > { %1620 = vmatprep.subr.msk.bf16.mxu0 %vm1619_vm5, %v2182_v40  ;;  %vm465_vm5 = vcmp.eq.s32.totalorder %v2462_v46, %v2446_v45  ;;  %v1310_v45 = vrot.slane %v1300_v41, %v2391_v27 }
  0x9e   : > { %vm1659_vm12 = vmpackc.low %vm467_vm6, %vm465_vm5  ;;  %vm600_vm5 = vcmp.eq.s32.totalorder %v2408_v35, %v2512_v52  ;;  %vm602_vm6 = vcmp.eq.s32.totalorder %v2411_v36, %v2512_v52 }
  0xa1   : > { %1656 = vmatpush1.bf16.xpose.msk.msra.mxu1 %vm1655_vm1, %v2182_v40  ;;  %vm1688_vm1 = vmpackc.low %vm603_vm11, %vm601_vm10  ;;  %vm739_vm10 = vcmp.eq.s32.totalorder %v2388_v26, %v2560_v60  ;;  %vm741_vm11 = vcmp.eq.s32.totalorder %v2405_v33, %v2560_v60 }
  0xa2   : > { %1658 = vmatprep.subr.msk.bf16.mxu1 %vm1657_vm2, %v2182_v40  ;;  %vm1700_vm2 = vmpackc.low %vm2546_vm13, %vm2546_vm13  ;;  %vm744_vm13 = vcmp.eq.s32.totalorder %v2408_v35, %v2528_v56 }
  0xa4   : > { %1622 = vmatpush1.bf16.xpose.msk.msra.mxu0 %vm1621_vm14, %v2182_v40  ;;  %vm1686_vm14 = vmpackc.low %vm598_vm8, %vm596_vm7  ;;  %vm605_vm7 = vcmp.eq.s32.totalorder %v2436_v42, %v2487_v49  ;;  %vm607_vm8 = vcmp.eq.s32.totalorder %v2439_v43, %v2487_v49 }
  0xa5   : > { %1685 = vmatprep.subr.msk.bf16.mxu0 %vm1684_vm3, %v2182_v40  ;;  %vm2564_vm3 = vcmp.eq.s32.totalorder %v2388_v26, %v512_v57  ;;  %vm1692_vm15 = vmpackc.low %vm607_vm8, %vm605_vm7  ;;  %vm611_vm7 = vcmp.eq.s32.totalorder %v2465_v47, %v2487_v49  ;;  %vm743_vm8 = vcmp.eq.s32.totalorder %v2408_v35, %v2560_v60 }
  0xa9   : > { %1660 = vmatpush1.bf16.xpose.msk.msra.mxu1 %vm1659_vm12, %v2182_v40  ;;  %vm1690_vm12 = vmpackc.low %vm602_vm6, %vm600_vm5  ;;  %vm606_vm5 = vcmp.eq.s32.totalorder %v2439_v43, %v2512_v52  ;;  %vm609_vm6 = vcmp.eq.s32.totalorder %v2462_v46, %v2487_v49 }
  0xaa   : > { %1724 = vmatprep.subr.msk.bf16.mxu1 %vm1723_vm4, %v2182_v40  ;;  %vm604_vm4 = vcmp.eq.s32.totalorder %v2436_v42, %v2512_v52 }
  0xab   : > { %1626 = vmatmul.mubr.msk.bf16.vlgmr.msra.gmra.mrb[0].mxu0 %vm1625_vm9, %v2182_v40  ;;  %vm1663_vm9 = vmpackc.low %vm2564_vm3, %vm2564_vm3 }
  0xac   : > { %1687 = vmatpush1.bf16.xpose.msk.msra.mxu0 %vm1686_vm14, %v2182_v40  ;;  %1701 = vmatprep.mubr.msk.bf16.mxu0 %vm1700_vm2, %v2182_v40  ;;  %vm746_vm14 = vcmp.eq.s32.totalorder %v2411_v36, %v2528_v56  ;;  %vm1739_vm3 = vmpackc.low %vm2595_vm0, %vm2595_vm0  ;;  %vm608_vm0 = vcmp.eq.s32.totalorder %v2462_v46, %v2512_v52 }
  0xad   : > { %1689 = vmatprep.subr.msk.bf16.mxu0 %vm1688_vm1, %v2182_v40  ;;  %vm1725_vm1 = vmpackc.low %vm741_vm11, %vm739_vm10  ;;  %vm748_vm11 = vcmp.eq.s32.totalorder %v2436_v42, %v2528_v56 }
  0xae   : > { %vm1727_vm2 = vmpackc.low %vm746_vm14, %vm744_vm13 }
  0xaf   : > { %vm1694_vm10 = vmpackc.low %vm606_vm5, %vm604_vm4  ;;  %vm752_vm4 = vcmp.eq.s32.totalorder %v2462_v46, %v2528_v56  ;;  %vm754_vm5 = vcmp.eq.s32.totalorder %v2465_v47, %v2528_v56 }
  0xb0   : > { %1664 = vmatmul.mubr.msk.bf16.vlgmr.msra.gmra.mrb[0].mxu1 %vm1663_vm9, %v2182_v40  ;;  %vm745_vm9 = vcmp.eq.s32.totalorder %v2411_v36, %v2560_v60  ;;  %vm1696_vm13 = vmpackc.low %vm611_vm7, %vm609_vm6 }
  0xb1   : > { %1726 = vmatpush1.bf16.xpose.msk.msra.mxu1 %vm1725_vm1, %v2182_v40  ;;  %1740 = vmatprep.mubr.msk.bf16.mxu1 %vm1739_vm3, %v2182_v40  ;;  %vm1729_vm14 = vmpackc.low %vm745_vm9, %vm743_vm8  ;;  %vm610_vm1 = vcmp.eq.s32.totalorder %v2465_v47, %v2512_v52  ;;  %vm749_vm3 = vcmp.eq.s32.totalorder %v2439_v43, %v2560_v60  ;;  %vm660_vm9 = vcmp.eq.s32.totalorder %v2388_v26, %v655_v0 }
  0xb2   : > { %1728 = vmatprep.subr.msk.bf16.mxu1 %vm1727_vm2, %v2182_v40  ;;  %vm747_vm2 = vcmp.eq.s32.totalorder %v2436_v42, %v2560_v60  ;;  %vm1698_vm6 = vmpackc.low %vm610_vm1, %vm608_vm0  ;;  %vm883_vm0 = vcmp.eq.s32.totalorder %v2388_v26, %v881_v3  ;;  %vm885_vm1 = vcmp.eq.s32.totalorder %v2405_v33, %v881_v3 }
  0xb3   : > { %vm1733_vm7 = vmpackc.low %vm749_vm3, %vm747_vm2  ;;  %vm882_vm3 = vcmp.eq.s32.totalorder %v2388_v26, %v877_v4 }
  0xb4   : > { %1691 = vmatpush1.bf16.xpose.msk.msra.mxu0 %vm1690_vm12, %v2182_v40  ;;  %vm750_vm12 = vcmp.eq.s32.totalorder %v2439_v43, %v2528_v56  ;;  %vm1735_vm8 = vmpackc.low %vm754_vm5, %vm752_vm4  ;;  %vm884_vm4 = vcmp.eq.s32.totalorder %v2405_v33, %v877_v4 }
  0xb5   : > { %1693 = vmatprep.subr.msk.bf16.mxu0 %vm1692_vm15, %v2182_v40  ;;  %vm1731_vm15 = vmpackc.low %vm750_vm12, %vm748_vm11  ;;  %vm753_vm11 = vcmp.eq.s32.totalorder %v2465_v47, %v2560_v60 }
  0xb6   : > { %vm1702_vm12 = vmpackc.low %vm660_vm9, %vm660_vm9  ;;  %vm886_vm9 = vcmp.eq.s32.totalorder %v2408_v35, %v877_v4 }
  0xb7   : > { %vm1762_vm2 = vmpackc.low %vm885_vm1, %vm883_vm0  ;;  %vm890_vm0 = vcmp.eq.s32.totalorder %v2436_v42, %v877_v4  ;;  %vm892_vm1 = vcmp.eq.s32.totalorder %v2439_v43, %v877_v4 }
  0xb8   : > { %vm1764_vm5 = vmpackc.low %vm884_vm4, %vm882_vm3  ;;  %vm895_vm3 = vcmp.eq.s32.totalorder %v2462_v46, %v881_v3  ;;  %vm897_vm4 = vcmp.eq.s32.totalorder %v2465_v47, %v881_v3 }
  0xb9   : > { %1730 = vmatpush1.bf16.xpose.msk.msra.mxu1 %vm1729_vm14, %v2182_v40  ;;  %vm803_vm14 = vcmp.eq.s32.totalorder %v2388_v26, %v798_v1 }
  0xba   : > { %1732 = vmatprep.subr.msk.bf16.mxu1 %vm1731_vm15, %v2182_v40  ;;  %vm1741_vm15 = vmpackc.low %vm803_vm14, %vm803_vm14  ;;  %vm947_vm14 = vcmp.eq.s32.totalorder %v2388_v26, %v945_v6 }
  0xbc   : > { %1695 = vmatpush1.bf16.xpose.msk.msra.mxu0 %vm1694_vm10, %v2182_v40  ;;  %vm751_vm10 = vcmp.eq.s32.totalorder %v2462_v46, %v2560_v60 }
  0xbd   : > { %1697 = vmatprep.subr.msk.bf16.mxu0 %vm1696_vm13, %v2182_v40  ;;  %vm1737_vm13 = vmpackc.low %vm753_vm11, %vm751_vm10  ;;  %vm888_vm10 = vcmp.eq.s32.totalorder %v2411_v36, %v877_v4  ;;  %vm891_vm11 = vcmp.eq.s32.totalorder %v2436_v42, %v881_v3 }
  0xc1   : > { %1734 = vmatpush1.bf16.xpose.msk.msra.mxu1 %vm1733_vm7, %v2182_v40  ;;  %vm889_vm7 = vcmp.eq.s32.totalorder %v2411_v36, %v881_v3 }
  0xc2   : > { %1736 = vmatprep.subr.msk.bf16.mxu1 %vm1735_vm8, %v2182_v40 }
  0xc4   : > { %1699 = vmatpush1.bf16.xpose.msk.msra.mxu0 %vm1698_vm6, %v2182_v40  ;;  %vm887_vm6 = vcmp.eq.s32.totalorder %v2408_v35, %v881_v3 }
  0xc5   : > { %1763 = vmatprep.subr.msk.bf16.mxu0 %vm1762_vm2, %v2182_v40  ;;  %vm1766_vm8 = vmpackc.low %vm889_vm7, %vm887_vm6  ;;  %vm1026_vm7 = vcmp.eq.s32.totalorder %v2388_v26, %v1024_v9 }
  0xc6   : > { %vm1778_vm2 = vmpackc.low %vm947_vm14, %vm947_vm14 }
  0xc7   : > { %vm2688_vm6 = vmpackc.low %vm897_vm4, %vm895_vm3  ;;  %vm1036_vm3 = vcmp.eq.s32.totalorder %v2439_v43, %v1024_v9  ;;  %vm1090_vm4 = vcmp.eq.s32.totalorder %v2388_v26, %v1088_v13 }
  0xc9   : > { %1738 = vmatpush1.bf16.xpose.msk.msra.mxu1 %vm1737_vm13, %v2182_v40  ;;  %vm1768_vm13 = vmpackc.low %vm888_vm10, %vm886_vm9  ;;  %vm1025_vm9 = vcmp.eq.s32.totalorder %v2388_v26, %v1020_v8  ;;  %vm1027_vm10 = vcmp.eq.s32.totalorder %v2405_v33, %v1020_v8 }
  0xca   : > { %vm1803_vm14 = vmpackc.low %vm1027_vm10, %vm1025_vm9 }
  0xcb   : > { %1703 = vmatmul.mubr.msk.bf16.vlgmr.msra.gmra.mrb[4].mxu0 %vm1702_vm12, %v2182_v40  ;;  %vm893_vm12 = vcmp.eq.s32.totalorder %v2439_v43, %v881_v3 }
  0xcc   : > { %1765 = vmatpush1.bf16.xpose.msk.msra.mxu0 %vm1764_vm5, %v2182_v40  ;;  %1779 = vmatprep.mubr.msk.bf16.mxu0 %vm1778_vm2, %v2182_v40  ;;  %vm2682_vm5 = vmpackc.low %vm892_vm1, %vm890_vm0  ;;  %vm1029_vm0 = vcmp.eq.s32.totalorder %v2408_v35, %v1020_v8  ;;  %vm1031_vm1 = vcmp.eq.s32.totalorder %v2411_v36, %v1020_v8  ;;  %vm1034_vm2 = vcmp.eq.s32.totalorder %v2436_v42, %v1024_v9 }
  0xcd   : > { %1767 = vmatprep.subr.msk.bf16.mxu0 %vm1766_vm8, %v2182_v40  ;;  %vm1028_vm8 = vcmp.eq.s32.totalorder %v2405_v33, %v1024_v9  ;;  %vm1807_vm9 = vmpackc.low %vm1031_vm1, %vm1029_vm0 }
  0xce   : > { %vm1809_vm10 = vmpackc.low %vm1036_vm3, %vm1034_vm2  ;;  %vm1037_vm3 = vcmp.eq.s32.totalorder %v2462_v46, %v1020_v8 }
  0xd0   : > { %1742 = vmatmul.mubr.msk.bf16.vlgmr.msra.gmra.mrb[4].mxu1 %vm1741_vm15, %v2182_v40  ;;  %vm1770_vm15 = vmpackc.low %vm893_vm12, %vm891_vm11  ;;  %vm1030_vm12 = vcmp.eq.s32.totalorder %v2408_v35, %v1024_v9 }
  0xd1   : > { %vm1801_vm11 = vmpackc.low %vm1028_vm8, %vm1026_vm7  ;;  %vm894_vm7 = vcmp.eq.s32.totalorder %v2462_v46, %v877_v4  ;;  %vm896_vm8 = vcmp.eq.s32.totalorder %v2465_v47, %v877_v4 }
  0xd2   : > { %1802 = vmatprep.subr.msk.bf16.mxu1 %vm1801_vm11, %v2182_v40  ;;  %vm1817_vm11 = vmpackc.low %vm1090_vm4, %vm1090_vm4  ;;  %vm1039_vm4 = vcmp.eq.s32.totalorder %v2465_v47, %v1020_v8 }
  0xd3   : > { %1804 = vmatpush1.bf16.xpose.msk.msra.mxu1 %vm1803_vm14, %v2182_v40  ;;  %1818 = vmatprep.mubr.msk.bf16.mxu1 %vm1817_vm11, %v2182_v40  ;;  %vm1038_vm14 = vcmp.eq.s32.totalorder %v2462_v46, %v1024_v9  ;;  %vm1170_vm11 = vcmp.eq.s32.totalorder %v2405_v33, %v1163_v16 }
  0xd4   : > { %1769 = vmatpush1.bf16.xpose.msk.msra.mxu0 %vm1768_vm13, %v2182_v40  ;;  %vm1032_vm13 = vcmp.eq.s32.totalorder %v2411_v36, %v1024_v9 }
  0xd5   : > { %1771 = vmatprep.subr.msk.bf16.mxu0 %vm1770_vm15, %v2182_v40  ;;  %vm1805_vm15 = vmpackc.low %vm1032_vm13, %vm1030_vm12  ;;  %vm946_vm12 = vcmp.eq.s32.totalorder %v2388_v26, %v941_v14  ;;  %vm1035_vm13 = vcmp.eq.s32.totalorder %v2439_v43, %v1020_v8 }
  0xd6   : > { %1806 = vmatprep.subr.msk.bf16.mxu1 %vm1805_vm15, %v2182_v40  ;;  %vm1040_vm15 = vcmp.eq.s32.totalorder %v2465_v47, %v1024_v9  ;;  %vm1780_vm0 = vmpackc.low %vm946_vm12, %vm946_vm12  ;;  %vm1173_vm12 = vcmp.eq.s32.totalorder %v2408_v35, %v1167_v17 }
  0xd7   : > { %vm1813_vm2 = vmpackc.low %vm1040_vm15, %vm1038_vm14  ;;  %vm1089_vm15 = vcmp.eq.s32.totalorder %v2388_v26, %v1084_v18 }
  0xdb   : > { %1808 = vmatpush1.bf16.xpose.msk.msra.mxu1 %vm1807_vm9, %v2182_v40  ;;  %vm1171_vm9 = vcmp.eq.s32.totalorder %v2405_v33, %v1167_v17 }
  0xdc   : > { %1773 = vmatpush1.bf16.xpose.msk.msra.mxu0 %vm2682_vm5, %v2182_v40  ;;  %vm1776_vm5 = vmpackc.low %vm896_vm8, %vm894_vm7  ;;  %1810 = vmatprep.subr.msk.bf16.mxu1 %vm1809_vm10, %v2182_v40  ;;  %vm1169_vm8 = vcmp.eq.s32.totalorder %v2388_v26, %v1167_v17  ;;  %vm1168_vm10 = vcmp.eq.s32.totalorder %v2388_v26, %v1163_v16 }
  0xdd   : > { %1775 = vmatprep.subr.msk.bf16.mxu0 %vm2688_vm6, %v2182_v40  ;;  %vm1033_vm6 = vcmp.eq.s32.totalorder %v2436_v42, %v1020_v8  ;;  %vm1815_vm7 = vmpackc.low %vm1039_vm4, %vm1037_vm3  ;;  %vm1179_vm3 = vcmp.eq.s32.totalorder %v2439_v43, %v1167_v17 }
  0xde   : > { %vm1811_vm1 = vmpackc.low %vm1035_vm13, %vm1033_vm6  ;;  %vm1175_vm6 = vcmp.eq.s32.totalorder %v2411_v36, %v1167_v17 }
  0xdf   : > { %vm1842_vm13 = vmpackc.low %vm1170_vm11, %vm1168_vm10  ;;  %vm1176_vm10 = vcmp.eq.s32.totalorder %v2436_v42, %v1163_v16  ;;  %vm1178_vm11 = vcmp.eq.s32.totalorder %v2439_v43, %v1163_v16 }
  0xe0   : > { %vm1844_vm14 = vmpackc.low %vm1175_vm6, %vm1173_vm12  ;;  %vm1181_vm12 = vcmp.eq.s32.totalorder %v2462_v46, %v1167_v17  ;;  %vm1183_vm6 = vcmp.eq.s32.totalorder %v2465_v47, %v1167_v17 }
  0xe1   : > { %vm1819_vm4 = vmpackc.low %vm1089_vm15, %vm1089_vm15 }
  0xe2   : > { %vm1852_vm15 = vmpackc.low %vm1183_vm6, %vm1181_vm12  ;;  %vm1316_vm12 = vcmp.eq.s32.totalorder %v2408_v35, %v1310_v45  ;;  %vm1318_vm6 = vcmp.eq.s32.totalorder %v2411_v36, %v1310_v45 }
  0xe3   : > { %1812 = vmatpush1.bf16.xpose.msk.msra.mxu1 %vm1811_vm1, %v2182_v40  ;;  %vm1174_vm1 = vcmp.eq.s32.totalorder %v2411_v36, %v1163_v16 }
  0xe4   : > { %1777 = vmatpush1.bf16.xpose.msk.msra.mxu0 %vm1776_vm5, %v2182_v40  ;;  %1814 = vmatprep.subr.msk.bf16.mxu1 %vm1813_vm2, %v2182_v40  ;;  %vm1840_vm5 = vmpackc.low %vm1171_vm9, %vm1169_vm8  ;;  %vm1177_vm2 = vcmp.eq.s32.totalorder %v2436_v42, %v1167_v17 }
  0xe5   : > { %1841 = vmatprep.subr.msk.bf16.mxu0 %vm1840_vm5, %v2182_v40  ;;  %vm1848_vm9 = vmpackc.low %vm1179_vm3, %vm1177_vm2  ;;  %vm1232_vm3 = vcmp.eq.s32.totalorder %v2388_v26, %v1227_v39 }
  0xe6   : > { %vm1850_vm5 = vmpackc.low %vm1178_vm11, %vm1176_vm10  ;;  %vm1311_vm10 = vcmp.eq.s32.totalorder %v2388_v26, %v1306_v44 }
  0xeb   : > { %1781 = vmatmul.mubr.msk.bf16.vlgmr.msra.gmra.mrb[8].mxu0 %vm1780_vm0, %v2182_v40  ;;  %1816 = vmatpush1.bf16.xpose.msk.msra.mxu1 %vm1815_vm7, %v2182_v40  ;;  %vm1172_vm0 = vcmp.eq.s32.totalorder %v2408_v35, %v1163_v16  ;;  %vm423_vm7 = vcmask 523264  }
  0xec   : > { %1843 = vmatpush1.bf16.xpose.msk.msra.mxu0 %vm1842_vm13, %v2182_v40  ;;  %vm1846_vm8 = vmpackc.low %vm1174_vm1, %vm1172_vm0  ;;  %vm1180_vm13 = vcmp.eq.s32.totalorder %v2462_v46, %v1163_v16  ;;  %vm1233_vm1 = vcmp.eq.s32.totalorder %v2388_v26, %v1231_v38 }
  0xed   : > { %1845 = vmatprep.subr.msk.bf16.mxu0 %vm1844_vm14, %v2182_v40  ;;  %vm1182_vm14 = vcmp.eq.s32.totalorder %v2465_v47, %v1163_v16  ;;  %vm1856_vm2 = vmpackc.low %vm1233_vm1, %vm1233_vm1 }
  0xee   : > { %vm1854_vm0 = vmpackc.low %vm1182_vm14, %vm1180_vm13  ;;  %1857 = vmatprep.mubr.msk.bf16.mxu0 %vm1856_vm2, %v2182_v40  ;;  %vm1320_vm2 = vcmp.eq.s32.totalorder %v2436_v42, %v1310_v45 }
  0xef   : > { %vm1883_vm14 = vmpackc.low %vm1318_vm6, %vm1316_vm12  ;;  %vm1323_vm6 = vcmp.eq.s32.totalorder %v2462_v46, %v1306_v44 }
  0xf2   : > { %1820 = vmatmul.mubr.msk.bf16.vlgmr.msra.gmra.mrb[8].mxu1 %vm1819_vm4, %v2182_v40  ;;  %vm1858_vm4 = vmpackc.low %vm1232_vm3, %vm1232_vm3  ;;  %vm1322_vm3 = vcmp.eq.s32.totalorder %v2439_v43, %v1310_v45 }
  0xf4   : > { %1847 = vmatpush1.bf16.xpose.msk.msra.mxu0 %vm1846_vm8, %v2182_v40  ;;  %vm1312_vm8 = vcmp.eq.s32.totalorder %v2388_v26, %v1310_v45 }
  0xf5   : > { %1849 = vmatprep.subr.msk.bf16.mxu0 %vm1848_vm9, %v2182_v40  ;;  %vm1314_vm9 = vcmp.eq.s32.totalorder %v2405_v33, %v1310_v45 }
  0xf6   : > { %vm1879_vm11 = vmpackc.low %vm1314_vm9, %vm1312_vm8  ;;  %vm1319_vm8 = vcmp.eq.s32.totalorder %v2436_v42, %v1306_v44  ;;  %vm1321_vm9 = vcmp.eq.s32.totalorder %v2439_v43, %v1306_v44 }
  0xf7   : > { %1880 = vmatprep.subr.msk.bf16.mxu1 %vm1879_vm11, %v2182_v40  ;;  %vm1324_vm11 = vcmp.eq.s32.totalorder %v2462_v46, %v1310_v45 }
  0xfc   : > { %1851 = vmatpush1.bf16.xpose.msk.msra.mxu0 %vm1850_vm5, %v2182_v40  ;;  %vm1313_vm5 = vcmp.eq.s32.totalorder %v2405_v33, %v1306_v44 }
  0xfd   : > { %1853 = vmatprep.subr.msk.bf16.mxu0 %vm1852_vm15, %v2182_v40  ;;  %vm1881_vm13 = vmpackc.low %vm1313_vm5, %vm1311_vm10  ;;  %vm1315_vm15 = vcmp.eq.s32.totalorder %v2408_v35, %v1306_v44  ;;  %vm1326_vm5 = vcmp.eq.s32.totalorder %v2465_v47, %v1310_v45  ;;  %v1302_v35 = vld [vmem:[#allocation3 + $0x7] ss:$8 sm:$0x3] }
  0xfe   : > { %1882 = vmatpush1.bf16.xpose.msk.msra.mxu1 %vm1881_vm13, %v2182_v40  ;;  %vm1889_vm10 = vmpackc.low %vm1321_vm9, %vm1319_vm8  ;;  %vm1325_vm13 = vcmp.eq.s32.totalorder %v2465_v47, %v1306_v44  ;;  %v1370_v42 = vrot.slane %v1302_v35, %v2394_v28 }
  0xff   : > { %1884 = vmatprep.subr.msk.bf16.mxu1 %vm1883_vm14, %v2182_v40  ;;  %vm1891_vm12 = vmpackc.low %vm1326_vm5, %vm1324_vm11 }
 0x100   : > { %vm1893_vm14 = vmpackc.low %vm1325_vm13, %vm1323_vm6 }
 0x104   : > { %1855 = vmatpush1.bf16.xpose.msk.msra.mxu0 %vm1854_vm0, %v2182_v40  ;;  %vm1317_vm0 = vcmp.eq.s32.totalorder %v2411_v36, %v1306_v44  ;;  %v1374_v36 = vrot.slane %v1302_v35, %v2391_v27 }
 0x105   : > { %vm1885_vm1 = vmpackc.low %vm1317_vm0, %vm1315_vm15 }
 0x106   : > { %1886 = vmatpush1.bf16.xpose.msk.msra.mxu1 %vm1885_vm1, %v2182_v40  ;;  %vm1376_vm15 = vcmp.eq.s32.totalorder %v2388_v26, %v1374_v36  ;;  %vm1375_vm1 = vcmp.eq.s32.totalorder %v2388_v26, %v1370_v42 }
 0x107   : > { %vm1895_vm0 = vmpackc.low %vm1376_vm15, %vm1376_vm15 }
 0x108   : > { %1896 = vmatprep.mubr.msk.bf16.mxu1 %vm1895_vm0, %v2182_v40 }
 0x10b   : > { %1859 = vmatmul.mubr.msk.bf16.vlgmr.msra.gmra.mrb[12].mxu0 %vm1858_vm4, %v2182_v40  ;;  %vm1887_vm4 = vmpackc.low %vm1322_vm3, %vm1320_vm2 }
 0x10c   : > { %1888 = vmatprep.subr.msk.bf16.mxu1 %vm1887_vm4, %v2182_v40  ;;  %vm1897_vm2 = vmpackc.low %vm1375_vm1, %vm1375_vm1 }
 0x10e   : > { %1890 = vmatpush1.bf16.xpose.msk.msra.mxu1 %vm1889_vm10, %v2182_v40 }
 0x10f   : > { %1892 = vmatprep.subr.msk.bf16.mxu1 %vm1891_vm12, %v2182_v40 }
 0x116   : > { %1894 = vmatpush1.bf16.xpose.msk.msra.mxu1 %vm1893_vm14, %v2182_v40 }
 0x11d   : > { %1898 = vmatmul.mubr.msk.bf16.vlgmr.msra.gmra.mrb[12].mxu1 %vm1897_vm2, %v2182_v40 }
 0x17e   : > { %v2753_v19 = vpop.f32.mrb[0].mxu0 }
 0x17f   : > { %v418_v20 = vpop.f32.mrb[1].mxu0  ;;  %v422_v21 = vmul.f32 %v2753_v19, %v2753_v19 }
 0x180   : > { %v419_v22 = vpop.f32.mrb[2].mxu0 }
 0x181   : > { %v420_v23 = vpop.f32.mrb[3].mxu0  ;;  %v424_v24 = vsel %vm423_vm7, %v422_v21, 0.0 }
 0x182   : > { %425 = vadd.xlane.f32.xlu0 %v424_v24 }
 0x183   : > { %v2758_v25 = vpop.f32.mrb[0].mxu1 }
 0x184   : > { %v565_v29 = vmul.f32 %v2758_v25, %v2758_v25  ;;  %v561_v30 = vpop.f32.mrb[1].mxu1 }
 0x185   : > { %v562_v31 = vpop.f32.mrb[2].mxu1 }
 0x186   : > { %v566_v32 = vsel %vm423_vm7, %v565_v29, 0.0  ;;  %v563_v34 = vpop.f32.mrb[3].mxu1 }
 0x187   : > { %567 = vadd.xlane.f32.xlu0 %v566_v32 }
 0x19e   : > { %v2778_v48 = vpop.f32.mrb[4].mxu0 }
 0x19f   : > { %v708_v49 = vmul.f32 %v2778_v48, %v2778_v48  ;;  %v704_v50 = vpop.f32.mrb[5].mxu0 }
 0x1a0   : > { %v705_v51 = vpop.f32.mrb[6].mxu0 }
 0x1a1   : > { %v709_v52 = vsel %vm423_vm7, %v708_v49, 0.0  ;;  %v706_v53 = vpop.f32.mrb[7].mxu0 }
 0x1a2   : > { %710 = vadd.xlane.f32.xlu1 %v709_v52 }
 0x1a3   : > { %v2796_v33 = vpop.f32.mrb[4].mxu1 }
 0x1a4   : > { %v851_v54 = vmul.f32 %v2796_v33, %v2796_v33  ;;  %v847_v55 = vpop.f32.mrb[5].mxu1 }
 0x1a5   : > { %v848_v56 = vpop.f32.mrb[6].mxu1 }
 0x1a6   : > { %v852_v57 = vsel %vm423_vm7, %v851_v54, 0.0  ;;  %v849_v58 = vpop.f32.mrb[7].mxu1 }
 0x1a7   : > { %853 = vadd.xlane.f32.xlu1 %v852_v57 }
 0x1be   : > { %v2820_v43 = vpop.f32.mrb[8].mxu0 }
 0x1bf   : > { %v994_v46 = vmul.f32 %v2820_v43, %v2820_v43  ;;  %v990_v47 = vpop.f32.mrb[9].mxu0 }
 0x1c0   : > { %v991_v59 = vpop.f32.mrb[10].mxu0 }
 0x1c1   : > { %v995_v27 = vsel %vm423_vm7, %v994_v46, 0.0  ;;  %v992_v28 = vpop.f32.mrb[11].mxu0 }
 0x1c2   : > { %996 = vadd.xlane.f32.xlu0 %v995_v27 }
 0x1c5   : > { %v2825_v40 = vpop.f32.mrb[8].mxu1 }
 0x1c6   : > { %v1137_v2 = vmul.f32 %v2825_v40, %v2825_v40  ;;  %v1133_v3 = vpop.f32.mrb[9].mxu1 }
 0x1c7   : > { %v1134_v4 = vpop.f32.mrb[10].mxu1 }
 0x1c8   : > { %v1138_v5 = vsel %vm423_vm7, %v1137_v2, 0.0  ;;  %v1135_v6 = vpop.f32.mrb[11].mxu1 }
 0x1c9   : > { %1139 = vadd.xlane.f32.xlu1 %v1138_v5 }
 0x1de   : > { %v2831_v16 = vpop.f32.mrb[12].mxu0 }
 0x1df   : > { %v1280_v17 = vmul.f32 %v2831_v16, %v2831_v16  ;;  %v1276_v18 = vpop.f32.mrb[13].mxu0 }
 0x1e0   : > { %v1277_v20 = vpop.f32.mrb[14].mxu0 }
 0x1e1   : > { %v1281_v21 = vsel %vm423_vm7, %v1280_v17, 0.0  ;;  %v1278_v22 = vpop.f32.mrb[15].mxu0 }
 0x1e2   : > { %1282 = vadd.xlane.f32.xlu0 %v1281_v21 }
 0x1f0   : > { %v2843_v44 = vpop.f32.mrb[12].mxu1 }
 0x1f1   : > { %v1419_v45 = vpop.f32.mrb[13].mxu1 }
 0x1f2   : > { %v1420_v49 = vpop.f32.mrb[14].mxu1 }
 0x1f3   : > { %v1421_v51 = vpop.f32.mrb[15].mxu1 }
 0x20f   : > { %v426_v60 = vpop.xlane.xlu0 %425 }
 0x210   : > { %v427_v61 = vrot.slane %v426_v60, 4 }
 0x212   : > { %v428_v62 = vadd.f32 %v427_v61, %v426_v60 }
 0x214   : > { %v429_v26 = vrot.slane %v428_v62, 2  ;;  %v568_v7 = vpop.xlane.xlu0 %567 }
 0x215   : > { %v569_v8 = vrot.slane %v568_v7, 4 }
 0x216   : > { %v430_v63 = vadd.f32 %v429_v26, %v428_v62 }
 0x217   : > { %v570_v9 = vadd.f32 %v569_v8, %v568_v7 }
 0x218   : > { %v431_v0 = vrot.slane %v430_v63, 1 }
 0x219   : > { %v571_v10 = vrot.slane %v570_v9, 2 }
 0x21a   : > { %v432_v1 = vadd.f32 %v431_v0, %v430_v63 }
 0x21b   : > { %v572_v12 = vadd.f32 %v571_v10, %v570_v9 }
 0x21c   : > { %1909 = vpush %v432_v1 }
 0x21d   : > { %v573_v13 = vrot.slane %v572_v12, 1 }
 0x21f   : > { %v574_v15 = vadd.f32 %v573_v13, %v572_v12 }
 0x22f   : > { %v711_v23 = vpop.xlane.xlu1 %710 }
 0x230   : > { %v712_v24 = vrot.slane %v711_v23, 4 }
 0x232   : > { %v713_v29 = vadd.f32 %v712_v24, %v711_v23 }
 0x234   : > { %v714_v31 = vrot.slane %v713_v29, 2  ;;  %v854_v52 = vpop.xlane.xlu1 %853 }
 0x235   : > { %v855_v53 = vrot.slane %v854_v52, 4 }
 0x236   : > { %v715_v37 = vadd.f32 %v714_v31, %v713_v29 }
 0x237   : > { %v856_v54 = vadd.f32 %v855_v53, %v854_v52 }
 0x238   : > { %v716_v38 = vrot.slane %v715_v37, 1 }
 0x239   : > { %v857_v56 = vrot.slane %v856_v54, 2 }
 0x23a   : > { %v717_v41 = vadd.f32 %v716_v38, %v715_v37 }
 0x23b   : > { %v858_v35 = vadd.f32 %v857_v56, %v856_v54 }
 0x23d   : > { %v859_v36 = vrot.slane %v858_v35, 1 }
 0x23f   : > { %v860_v46 = vadd.f32 %v859_v36, %v858_v35 }
 0x24d   : > { %s1910_s22 = spop %1909 }
 0x24e   : > { %s434_s25 = smax.f32 %s2183_s9, %s1910_s22 }
 0x24f   : > { %v435_v11 = vstv %s434_s25  ;;  %v997_v47 = vpop.xlane.xlu0 %996 }
 0x250   : > { %2001 = vrsqrt.f32 %v435_v11  ;;  %v998_v59 = vrot.slane %v997_v47, 4 }
 0x252   : > { %v999_v27 = vadd.f32 %v998_v59, %v997_v47 }
 0x256   : > { %v1140_v1 = vpop.xlane.xlu1 %1139 }
 0x257   : > { %v1141_v2 = vrot.slane %v1140_v1, 4 }
 0x259   : > { %v1142_v3 = vadd.f32 %v1141_v2, %v1140_v1 }
 0x25a   : > { %v2002_v14 = vpop.eup %2001 }
 0x25b   : > { %1911 = vpush %v2002_v14 }
 0x25c   : > { %1913 = vpush %v574_v15 }
 0x26f   : > { %v1283_v11 = vpop.xlane.xlu0 %1282 }
 0x270   : > { %v1284_v12 = vrot.slane %v1283_v11, 4 }
 0x272   : > { %v1285_v13 = vadd.f32 %v1284_v12, %v1283_v11 }
 0x28c   : > { %s1912_s19 = spop %1911 }
 0x28d   : > { %v438_v30 = vstv %s1912_s19  ;;  %s1914_s29 = spop %1913 }
 0x28e   : > { %v439_v32 = vmul.f32 %v438_v30, %v2753_v19  ;;  %s576_s5 = smax.f32 %s2183_s9, %s1914_s29  ;;  %v1423_v19 = vmul.f32 %v2843_v44, %v2843_v44 }
 0x28f   : > { %v577_v34 = vstv %s576_s5 }
 0x290   : > { %440 = vst.msk [vmem:[%s2839_s26] sm:$0xff] %vm423_vm7, %v439_v32  ;;  %2003 = vrsqrt.f32 %v577_v34  ;;  %v1424_v50 = vsel %vm423_vm7, %v1423_v19, 0.0 }
 0x291   : > { %1425 = vadd.xlane.f32.xlu1 %v1424_v50 }
 0x29a   : > { %v2004_v39 = vpop.eup %2003 }
 0x29b   : > { %1915 = vpush %v2004_v39 }
 0x29c   : > { %1917 = vpush %v717_v41 }
 0x2cc   : > { %s1916_s27 = spop %1915 }
 0x2cd   : > { %v580_v55 = vstv %s1916_s27  ;;  %s1918_s4 = spop %1917 }
 0x2ce   : > { %v581_v57 = vmul.f32 %v580_v55, %v2758_v25  ;;  %s719_s7 = smax.f32 %s2183_s9, %s1918_s4  ;;  %v1000_v25 = vrot.slane %v999_v27, 2 }
 0x2cf   : > { %v720_v58 = vstv %s719_s7  ;;  %s1908_s7 = sshll.u32 %s2228_s16, 10  ;;  %s2184_s16 = smov [#allocation10]  }
 0x2d0   : > { %1665 = vst.msk [vmem:[%s2839_s26 + $0x8] sm:$0xff] %vm423_vm7, %v581_v57  ;;  %2005 = vrsqrt.f32 %v720_v58  ;;  %v1001_v62 = vadd.f32 %v1000_v25, %v999_v27 }
 0x2d2   : > { %v1002_v26 = vrot.slane %v1001_v62, 1 }
 0x2d4   : > { %v1003_v0 = vadd.f32 %v1002_v26, %v1001_v62 }
 0x2da   : > { %v2006_v42 = vpop.eup %2005 }
 0x2db   : > { %1919 = vpush %v2006_v42 }
 0x2dc   : > { %1921 = vpush %v860_v46 }
 0x30c   : > { %s1920_s6 = spop %1919 }
 0x30d   : > { %v723_v28 = vstv %s1920_s6  ;;  %s1922_s1 = spop %1921  ;;  %s1456_s6 = sshll.u32 %s2839_s26, 4  ;;  %s2879_s6 = int_to_ptr.vmem [resolvable:$true] %s1456_s6 }
 0x30e   : > { %v724_v60 = vmul.f32 %v723_v28, %v2778_v48  ;;  %s862_s17 = smax.f32 %s2183_s9, %s1922_s1  ;;  %v1143_v48 = vrot.slane %v1142_v3, 2 }
 0x30f   : > { %v863_v61 = vstv %s862_s17 }
 0x310   : > { %1704 = vst.msk [vmem:[%s2839_s26 + $0x10] sm:$0xff] %vm423_vm7, %v724_v60  ;;  %2007 = vrsqrt.f32 %v863_v61  ;;  %v1144_v7 = vadd.f32 %v1143_v48, %v1142_v3 }
 0x312   : > { %v1145_v8 = vrot.slane %v1144_v7, 1 }
 0x314   : > { %v1146_v10 = vadd.f32 %v1145_v8, %v1144_v7 }
 0x31a   : > { %v2008_v63 = vpop.eup %2007 }
 0x31b   : > { %1923 = vpush %v2008_v63 }
 0x31c   : > { %1925 = vpush %v1003_v0 }
 0x31e   : > { %v1426_v23 = vpop.xlane.xlu1 %1425 }
 0x31f   : > { %v1427_v24 = vrot.slane %v1426_v23, 4 }
 0x321   : > { %v1428_v29 = vadd.f32 %v1427_v24, %v1426_v23 }
 0x34c   : > { %s1924_s28 = spop %1923 }
 0x34d   : > { %v866_v4 = vstv %s1924_s28  ;;  %s1926_s8 = spop %1925 }
 0x34e   : > { %v867_v5 = vmul.f32 %v866_v4, %v2796_v33  ;;  %s1005_s20 = smax.f32 %s2183_s9, %s1926_s8  ;;  %v1286_v33 = vrot.slane %v1285_v13, 2  ;;  %s2877_s8 = scalar_lea.hbm %s2929_s3, %s1908_s7 }
 0x34f   : > { %v1006_v6 = vstv %s1005_s20  ;;  %s2107_s20 = scalar_lea.vmem %s2879_s6, 1024 }
 0x350   : > { %1743 = vst.msk [vmem:[%s2839_s26 + $0x18] sm:$0xff] %vm423_vm7, %v867_v5  ;;  %2009 = vrsqrt.f32 %v1006_v6  ;;  %v1287_v18 = vadd.f32 %v1286_v33, %v1285_v13  ;;  %p2108_p10 = scmp.ne.s32.totalorder %s2879_s6, %s2107_s20 }
 0x352   : > { %v1288_v20 = vrot.slane %v1287_v18, 1  ;;  %p2109_p7 = pnand %p2108_p10, %p2961_p5 }
 0x354   : > { %v1289_v22 = vadd.f32 %v1288_v20, %v1287_v18  ;;  %p2110_p9 = pneg %p2109_p7 }
 0x35a   : > { %v2010_v9 = vpop.eup %2009 }
 0x35b   : > { %1927 = vpush %v2010_v9 }
 0x35c   : > { %1929 = vpush %v1146_v10 }
 0x38c   : > { %s1928_s11 = spop %1927 }
 0x38d   : > { %v1009_v14 = vstv %s1928_s11  ;;  %s1930_s22 = spop %1929  ;;  %s2111_s11 = sshll.u32 %s2184_s16, 4  ;;  %s2112_s11 = int_to_ptr.vmem [resolvable:$false] %s2111_s11 }
 0x38e   : > { %v1010_v15 = vmul.f32 %v1009_v14, %v2820_v43  ;;  %s1148_s25 = smax.f32 %s2183_s9, %s1930_s22  ;;  %v1429_v43 = vrot.slane %v1428_v29, 2  ;;  %s2113_s22 = scalar_lea.vmem %s2112_s11, 2048 }
 0x38f   : > { %v1149_v17 = vstv %s1148_s25  ;;  %p2114_p6 = scmp.lt.s32.totalorder %s2879_s6, %s2112_s11  ;;  %p2115_p12 = scmp.lt.s32.totalorder %s2113_s22, %s2107_s20 }
 0x390   : > { %1782 = vst.msk [vmem:[%s2839_s26 + $0x20] sm:$0xff] %vm423_vm7, %v1010_v15  ;;  %2011 = vrsqrt.f32 %v1149_v17  ;;  %v1430_v34 = vadd.f32 %v1429_v43, %v1428_v29 }
 0x391   : > { %p2116_p0 = por %p2115_p12, %p2114_p6 }
 0x392   : > { %v1431_v37 = vrot.slane %v1430_v34, 1 }
 0x393   : > { %p2117_p8 = pnand %p2116_p0, %p2110_p9 }
 0x394   : > { %v1432_v39 = vadd.f32 %v1431_v37, %v1430_v34 }
 0x39a   : > { %v2012_v21 = vpop.eup %2011 }
 0x39b   : > { %1931 = vpush %v2012_v21 }
 0x39c   : > { %1933 = vpush %v1289_v22 }
 0x3cc   : > { %s1932_s30 = spop %1931 }
 0x3cd   : > { %v1152_v30 = vstv %s1932_s30  ;;  %s1934_s19 = spop %1933 }
 0x3ce   : > { %v1153_v31 = vmul.f32 %v1152_v30, %v2825_v40  ;;  %s1291_s29 = smax.f32 %s2183_s9, %s1934_s19 }
 0x3cf   : > { %v1292_v32 = vstv %s1291_s29 }
 0x3d0   : > { %1821 = vst.msk [vmem:[%s2839_s26 + $0x28] sm:$0xff] %vm423_vm7, %v1153_v31  ;;  %2013 = vrsqrt.f32 %v1292_v32 }
 0x3da   : > { %v2014_v38 = vpop.eup %2013 }
 0x3db   : > { %1935 = vpush %v2014_v38 }
 0x3dc   : > { %1937 = vpush %v1432_v39 }
 0x40c   : > { %s1936_s5 = spop %1935 }
 0x40d   : > { %v1295_v41 = vstv %s1936_s5  ;;  %s1938_s27 = spop %1937 }
 0x40e   : > { %v1296_v40 = vmul.f32 %v1295_v41, %v2831_v16  ;;  %s1434_s4 = smax.f32 %s2183_s9, %s1938_s27  ;;  %s1443_s9 = scalar_lea.sflag [#allocation6], %s2375_s10 }
 0x40f   : > { %v1435_v19 = vstv %s1434_s4 }
 0x410   : > { %1860 = vst.msk [vmem:[%s2839_s26 + $0x30] sm:$0xff] %vm423_vm7, %v1296_v40  ;;  %2015 = vrsqrt.f32 %v1435_v19 }
 0x41a   : > { %v2016_v45 = vpop.eup %2015 }
 0x41b   : > { %1939 = vpush %v2016_v45 }
 0x44c   : > { %s1940_s1 = spop %1939 }
 0x44d   : > { %v1438_v49 = vstv %s1940_s1 }
 0x44e   : > { %v1439_v16 = vmul.f32 %v1438_v49, %v2843_v44 }
 0x450   : > { %1899 = vst.msk [vmem:[%s2839_s26 + $0x38] sm:$0xff] %vm423_vm7, %v1439_v16 }
 0x451   : > { %2120 = shalt.err (!%p2117_p8)
}
 0x452   : > { %s2121_s26 = scalar_lea.hbm %s2877_s8, 1024  ;;  %s2125_s19 = scalar_lea.hbm %s2929_s3, 2048 }
 0x453   : > { %p2122_p13 = scmp.ne.s32.totalorder %s2877_s8, %s2121_s26  ;;  %p2126_p3 = scmp.lt.u32.totalorder %s2877_s8, %s2929_s3 }
 0x454   : > { %p2127_p4 = scmp.lt.u32.totalorder %s2125_s19, %s2121_s26  ;;  %p2129_p10 = scmp.lt.u32.totalorder %s2121_s26, %s2877_s8 }
 0x455   : > { %p2123_p11 = pnand %p2122_p13, %p2961_p5 }
 0x456   : > { %p2128_p2 = por %p2127_p4, %p2126_p3 }
 0x457   : > { %p2124_p1 = pneg %p2123_p11 }
 0x458   : > { %p2130_p7 = por %p2129_p10, %p2128_p2 }
 0x45a   : > { %p2131_p9 = pnand %p2130_p7, %p2124_p1 }
 0x45c   : > { %2134 = shalt.err (!%p2131_p9)
}
 0x45d   : > { %s2185_s27 = smov 128   ;;  %s2186_s4 = smov 8  }
 0x45e   : > { %1947 = dma.vmem_to_hbm [thread:$0]  (%p2961_p5), %s2879_s6, 1024, %s2877_s8, %s1443_s9, %s2185_s27, %s2185_s27, %s2186_s4  }
 0x45f PF: > { %s1471_s7 = sand.u32 1, %s2165_s12   ;;  %p2962_p6 = scmp.ne.s32.totalorder %s2937_s24, 0 }
 0x460   : > { %p2963_p12 = scmp.ge.s32.totalorder %s2177_s15, 2  ;;  %s1472_s1 = scalar_lea.sflag [#allocation6], %s1471_s7 }
 0x462   : > { %p1960_p0 = pnand %p2963_p12, %p2962_p6 }
 0x464   : > { %2160 = dma.done.wait (!%p1960_p0), %s1472_s1, 1024  }
 0x465   : > { %2162 = vsyncadd (!%p1960_p0), %s1472_s1, 4294966272  ;;  %p19_p8 = scmp.ge.s32.totalorder %s2232_s18, 4   ;;  %s2964_s12 = smov %s2169_s13 }
 0x466   : > { %s2965_s13 = smov %s2173_s14  ;;  %s2966_s14 = smov %s2244_s21 }
 0x467   : > { %s2967_s15 = smov %s2232_s18  ;;  %21 = sbr.rel (!%p19_p8) target bundleno = 9 (0x9), region = 122 }
 0x46e   :  { %1477 = vsyncpa [#allocation5], 1 }
 0x46f   :  { %1479 = vsyncpa [#allocation5 + $0x1], 1 }
 0x470   :  { %1480 = vsyncpa [#allocation8], 1 }
 0x471   :  { %1482 = vsyncpa [#allocation8 + $0x1], 1 }
 0x472   :  { %1483 = vsyncpa [#allocation6], 1 }
 0x473   :  { %1485 = vsyncpa [#allocation6 + $0x1], 1 }

</bundles_post_ra>
